<compile_context>
chip_gen: v7x
topology: tpu7x:2x2x1
jax: 0.10.0
libtpu: 0.0.40
codegen_flags: <defaults>
</compile_context>

<pallas_src>
import jax
import jax.numpy as jnp
from jax import lax
from jax.experimental import pallas as pl
from jax.experimental.pallas import tpu as pltpu

# ----------------------------- small config ---------------------------------
B, S, H, L = 2, 8, 32, 4      # batch, seq, hidden, num_labels
V, FF = 64, 64                # vocab size, feed-forward hidden
NEG_INF = -1e9


def _layernorm(x, gamma, beta, eps=1e-5):
    mu = jnp.mean(x, axis=-1, keepdims=True)
    var = jnp.mean((x - mu) ** 2, axis=-1, keepdims=True)
    return (x - mu) * lax.rsqrt(var + eps) * gamma + beta


# -------------------- fused forward kernel (one call, no grid) --------------
def fused_forward_kernel(ids_ref, mask_ref, labels_ref,
                         emb_ref, pos_ref, wqkv_ref, wo_ref,
                         ln1_g_ref, ln1_b_ref,
                         w1_ref, b1_ref, w2_ref, b2_ref,
                         ln2_g_ref, ln2_b_ref,
                         cls_w_ref, cls_b_ref,
                         loss_ref, pred_ref,
                         hid_ref):
    # ---- embedding: exact one-hot gather via MXU + positional add ----------
    ids = ids_ref[...]                                        # (B*S, 1) int32
    vocab_iota = lax.broadcasted_iota(jnp.int32, (B * S, V), 1)
    onehot = (vocab_iota == ids).astype(jnp.float32)          # (B*S, V)
    x = jnp.dot(onehot, emb_ref[...], preferred_element_type=jnp.float32)
    x = x + pos_ref[...]                                      # (B*S, H)

    # ---- Q/K/V projections, batched over all B*S rows ----------------------
    q = jnp.dot(x, wqkv_ref[0], preferred_element_type=jnp.float32)
    k = jnp.dot(x, wqkv_ref[1], preferred_element_type=jnp.float32)
    v = jnp.dot(x, wqkv_ref[2], preferred_element_type=jnp.float32)

    # ---- self-attention, per example (B=2, unrolled) -----------------------
    scale = 1.0 / float(H) ** 0.5
    lane = lax.broadcasted_iota(jnp.int32, (1, S), 1)         # hoisted
    attn_rows = []
    for b in range(B):
        qb = q[b * S:(b + 1) * S, :]
        kb = k[b * S:(b + 1) * S, :]
        vb = v[b * S:(b + 1) * S, :]
        # contract on H directly (no explicit k.T)
        s = lax.dot_general(qb, kb, (((1,), (1,)), ((), ())),
                            preferred_element_type=jnp.float32) * scale
        # additive key-padding bias built from SMEM mask scalars
        padv = jnp.zeros((1, S), jnp.int32)
        for t in range(S):
            padv = padv + jnp.where(lane == t,
                                    (mask_ref[b, t] == 0).astype(jnp.int32), 0)
        s = s + padv.astype(jnp.float32) * jnp.float32(NEG_INF)
        # softmax (max-subtracted), EUP approximate reciprocal for the denom
        s = s - jnp.max(s, axis=-1, keepdims=True)
        p = jnp.exp(s)
        p = p * pl.reciprocal(jnp.sum(p, axis=-1, keepdims=True), approx=True)
        attn_rows.append(jnp.dot(p, vb, preferred_element_type=jnp.float32))
    attn = jnp.concatenate(attn_rows, axis=0)                 # (B*S, H)
    attn = jnp.dot(attn, wo_ref[...], preferred_element_type=jnp.float32)

    # ---- residual + LN, FFN (batched over B*S), residual + LN --------------
    h1 = _layernorm(x + attn, ln1_g_ref[...], ln1_b_ref[...])
    ff = jnp.dot(h1, w1_ref[...], preferred_element_type=jnp.float32) + b1_ref[...]
    ff = jnp.maximum(ff, 0.0)
    ff = jnp.dot(ff, w2_ref[...], preferred_element_type=jnp.float32) + b2_ref[...]
    hid_ref[...] = _layernorm(h1 + ff, ln2_g_ref[...], ln2_b_ref[...])

    # ---- head: last-non-pad pooling -> linear -> CE loss + argmax ----------
    cls_w = cls_w_ref[...]
    cls_b = cls_b_ref[...]
    cls_iota = lax.broadcasted_iota(jnp.int32, (1, L), 1)
    loss_sum = jnp.zeros((1, 1), jnp.float32)
    for b in range(B):
        # sequence_lengths = ne(mask, 0).sum(-1) - 1   (scalar core, SMEM)
        n_valid = jnp.int32(0)
        for t in range(S):
            n_valid = n_valid + (mask_ref[b, t] != 0).astype(jnp.int32)
        # all-padding row: -1 wraps to the last token (PyTorch hidden[b, -1])
        seq_len = jnp.where(n_valid > 0, n_valid - 1, S - 1)
        pooled = hid_ref[pl.ds(b * S + seq_len, 1), :]        # (1, H)
        # dropout(p=0) is the identity
        logits = jnp.dot(pooled, cls_w,
                         preferred_element_type=jnp.float32) + cls_b  # (1, L)
        lmax = jnp.max(logits, axis=-1, keepdims=True)
        lse = jnp.log(jnp.sum(jnp.exp(logits - lmax), axis=-1,
                              keepdims=True)) + lmax
        lab = labels_ref[b]                                   # scalar (SMEM)
        picked = jnp.sum(jnp.where(cls_iota == lab, logits, 0.0),
                         axis=-1, keepdims=True)
        loss_sum = loss_sum + (lse - picked)
        # argmax, first occurrence (matches torch.argmax tie-breaking)
        is_max = logits == lmax
        pred_b = jnp.min(jnp.where(is_max, cls_iota, jnp.int32(L)),
                         axis=-1, keepdims=True)
        pred_ref[b:b + 1, :] = pred_b.astype(jnp.int32)
    loss_ref[...] = loss_sum * (1.0 / B)


# ------------------------------ wrapper --------------------------------------
def classification_forward(input_ids, attention_mask, labels, params):
    ids = input_ids.reshape(B * S, 1).astype(jnp.int32)
    mask = attention_mask.astype(jnp.int32)
    labels = labels.astype(jnp.int32)
    wqkv = jnp.stack([params["wq"], params["wk"], params["wv"]], axis=0)
    pos_tiled = jnp.tile(params["pos"], (B, 1))               # (B*S, H)

    vmem = pl.BlockSpec(memory_space=pltpu.MemorySpace.VMEM)
    smem = pl.BlockSpec(memory_space=pltpu.MemorySpace.SMEM)

    loss, preds = pl.pallas_call(
        fused_forward_kernel,
        out_shape=(jax.ShapeDtypeStruct((1, 1), jnp.float32),
                   jax.ShapeDtypeStruct((B, 1), jnp.int32)),
        in_specs=[vmem, smem, smem] + [vmem] * 14,
        out_specs=(vmem, vmem),
        scratch_shapes=[pltpu.VMEM((B * S, H), jnp.float32)],
    )(ids, mask, labels,
      params["emb"], pos_tiled, wqkv, params["wo"],
      params["ln1_g"], params["ln1_b"],
      params["w1"], params["b1"], params["w2"], params["b2"],
      params["ln2_g"], params["ln2_b"],
      params["cls_w"], params["cls_b"])
    return loss[0, 0], preds[:, 0]


# ----------------------------- parameter init -------------------------------
def init_params(key):
    ks = jax.random.split(key, 9)
    return {
        "emb": jax.random.normal(ks[0], (V, H), jnp.float32) * 0.02,
        "pos": jax.random.normal(ks[1], (S, H), jnp.float32) * 0.02,
        "wq": jax.random.normal(ks[2], (H, H), jnp.float32) * 0.05,
        "wk": jax.random.normal(ks[3], (H, H), jnp.float32) * 0.05,
        "wv": jax.random.normal(ks[4], (H, H), jnp.float32) * 0.05,
        "wo": jax.random.normal(ks[5], (H, H), jnp.float32) * 0.05,
        "ln1_g": jnp.ones((1, H), jnp.float32),
        "ln1_b": jnp.zeros((1, H), jnp.float32),
        "w1": jax.random.normal(ks[6], (H, FF), jnp.float32) * 0.05,
        "b1": jnp.zeros((1, FF), jnp.float32),
        "w2": jax.random.normal(ks[7], (FF, H), jnp.float32) * 0.05,
        "b2": jnp.zeros((1, H), jnp.float32),
        "ln2_g": jnp.ones((1, H), jnp.float32),
        "ln2_b": jnp.zeros((1, H), jnp.float32),
        # larger classifier scale -> well-separated logits, so the argmax check
        # is robust to the approximate-reciprocal softmax.
        "cls_w": jax.random.normal(ks[8], (H, L), jnp.float32) * 0.5,
        "cls_b": jnp.zeros((1, L), jnp.float32),
    }


# ------------------------------ pure-JAX reference --------------------------
def reference_forward(input_ids, mask, labels, p):
    x = p["emb"][input_ids] + p["pos"][None]
    outs = []
    for b in range(B):
        xb, mb = x[b], mask[b]
        q, k, v = xb @ p["wq"], xb @ p["wk"], xb @ p["wv"]
        s = (q @ k.T) / jnp.sqrt(jnp.float32(H))
        s = s + jnp.where(mb[None, :] == 0, NEG_INF, 0.0)
        pr = jax.nn.softmax(s, axis=-1)
        a = (pr @ v) @ p["wo"]
        h1 = _layernorm(xb + a, p["ln1_g"], p["ln1_b"])
        ff = jnp.maximum(h1 @ p["w1"] + p["b1"], 0.0) @ p["w2"] + p["b2"]
        outs.append(_layernorm(h1 + ff, p["ln2_g"], p["ln2_b"]))
    hidden = jnp.stack(outs)
    seq_len = jnp.sum(mask != 0, axis=-1) - 1
    pooled = hidden[jnp.arange(B), seq_len]
    logits = pooled @ p["cls_w"] + p["cls_b"]
    lse = jax.scipy.special.logsumexp(logits, axis=-1)
    loss = jnp.mean(lse - logits[jnp.arange(B), labels])
    preds = jnp.argmax(logits, axis=-1)
    return loss, preds


# ------------------------------------ main -----------------------------------
if __name__ == "__main__":
    key = jax.random.PRNGKey(0)
    pkey, dkey = jax.random.split(key)
    params = init_params(pkey)

    input_ids = jax.random.randint(dkey, (B, S), 0, V, dtype=jnp.int32)
    attention_mask = jnp.array(
        [[1] * S,
         [1] * 5 + [0] * (S - 5)], dtype=jnp.int32)           # example padding
    labels = jnp.array([1, 3], dtype=jnp.int32)

    forward = jax.jit(classification_forward)
    loss, preds = forward(input_ids, attention_mask, labels, params)
    loss = jax.block_until_ready(loss)
    preds = jax.block_until_ready(preds)
    predictions = preds.tolist()                              # mimics .tolist()

    # sanity check against a pure-JAX reference (approx-reciprocal softmax in
    # the kernel -> loose tolerance on loss, exact match on predictions)
    ref_loss, ref_preds = reference_forward(input_ids, attention_mask,
                                            labels, params)
    assert jnp.allclose(loss, ref_loss, atol=3e-2, rtol=3e-2), (loss, ref_loss)
    assert predictions == ref_preds.tolist(), (predictions, ref_preds)

    print("KERNEL_OK")
</pallas_src>

<mosaic_0001>
module attributes {stable_mosaic.version = 11 : i64} {
  func.func @fused_forward_kernel(%arg0: memref<16x1xi32, #tpu.memory_space<vmem>>, %arg1: memref<2x8xi32, #tpu.memory_space<smem>>, %arg2: memref<2xi32, #tpu.memory_space<smem>>, %arg3: memref<64x32xf32, #tpu.memory_space<vmem>>, %arg4: memref<16x32xf32, #tpu.memory_space<vmem>>, %arg5: memref<3x32x32xf32, #tpu.memory_space<vmem>>, %arg6: memref<32x32xf32, #tpu.memory_space<vmem>>, %arg7: memref<1x32xf32, #tpu.memory_space<vmem>>, %arg8: memref<1x32xf32, #tpu.memory_space<vmem>>, %arg9: memref<32x64xf32, #tpu.memory_space<vmem>>, %arg10: memref<1x64xf32, #tpu.memory_space<vmem>>, %arg11: memref<64x32xf32, #tpu.memory_space<vmem>>, %arg12: memref<1x32xf32, #tpu.memory_space<vmem>>, %arg13: memref<1x32xf32, #tpu.memory_space<vmem>>, %arg14: memref<1x32xf32, #tpu.memory_space<vmem>>, %arg15: memref<32x4xf32, #tpu.memory_space<vmem>>, %arg16: memref<1x4xf32, #tpu.memory_space<vmem>>, %arg17: memref<1x1xf32, #tpu.memory_space<vmem>>, %arg18: memref<2x1xi32, #tpu.memory_space<vmem>>, %arg19: memref<16x32xf32, #tpu.memory_space<vmem>>) attributes {dimension_semantics = [], scalar_prefetch = 0 : i64, scratch_operands = 1 : i64, tpu.core_type = #tpu.core_type<tc>} {
    %c0 = arith.constant 0 : index
    %c0_0 = arith.constant 0 : index
    %0 = vector.load %arg0[%c0, %c0_0] : memref<16x1xi32, #tpu.memory_space<vmem>>, vector<16x1xi32>
    %1 = tpu.iota {dimensions = array<i32: 1>} : vector<16x64xi32>
    %2 = vector.broadcast %0 : vector<16x1xi32> to vector<16x64xi32>
    %3 = arith.cmpi eq, %1, %2 : vector<16x64xi32>
    %4 = arith.extui %3 : vector<16x64xi1> to vector<16x64xi32>
    %5 = arith.sitofp %4 : vector<16x64xi32> to vector<16x64xf32>
    %c0_1 = arith.constant 0 : index
    %c0_2 = arith.constant 0 : index
    %6 = vector.load %arg3[%c0_1, %c0_2] : memref<64x32xf32, #tpu.memory_space<vmem>>, vector<64x32xf32>
    %cst = arith.constant dense<0.000000e+00> : vector<16x32xf32>
    %7 = tpu.matmul %5, %6, %cst {dimension_numbers = #tpu.dot_dimension_numbers<[1], [0], [0], [1], [0, 0, 1, 1], [], []>} : vector<16x64xf32>, vector<64x32xf32>, vector<16x32xf32> -> vector<16x32xf32>
    %c0_3 = arith.constant 0 : index
    %c0_4 = arith.constant 0 : index
    %8 = vector.load %arg4[%c0_3, %c0_4] : memref<16x32xf32, #tpu.memory_space<vmem>>, vector<16x32xf32>
    %9 = arith.addf %7, %8 : vector<16x32xf32>
    %c0_5 = arith.constant 0 : index
    %c0_6 = arith.constant 0 : index
    %c0_7 = arith.constant 0 : index
    %10 = vector.load %arg5[%c0_5, %c0_6, %c0_7] : memref<3x32x32xf32, #tpu.memory_space<vmem>>, vector<1x32x32xf32>
    %11 = vector.shape_cast %10 : vector<1x32x32xf32> to vector<32x32xf32>
    %cst_8 = arith.constant dense<0.000000e+00> : vector<16x32xf32>
    %12 = tpu.matmul %9, %11, %cst_8 {dimension_numbers = #tpu.dot_dimension_numbers<[1], [0], [0], [1], [0, 0, 1, 1], [], []>} : vector<16x32xf32>, vector<32x32xf32>, vector<16x32xf32> -> vector<16x32xf32>
    %c1 = arith.constant 1 : index
    %c0_9 = arith.constant 0 : index
    %c0_10 = arith.constant 0 : index
    %13 = vector.load %arg5[%c1, %c0_9, %c0_10] : memref<3x32x32xf32, #tpu.memory_space<vmem>>, vector<1x32x32xf32>
    %14 = vector.shape_cast %13 : vector<1x32x32xf32> to vector<32x32xf32>
    %cst_11 = arith.constant dense<0.000000e+00> : vector<16x32xf32>
    %15 = tpu.matmul %9, %14, %cst_11 {dimension_numbers = #tpu.dot_dimension_numbers<[1], [0], [0], [1], [0, 0, 1, 1], [], []>} : vector<16x32xf32>, vector<32x32xf32>, vector<16x32xf32> -> vector<16x32xf32>
    %c2 = arith.constant 2 : index
    %c0_12 = arith.constant 0 : index
    %c0_13 = arith.constant 0 : index
    %16 = vector.load %arg5[%c2, %c0_12, %c0_13] : memref<3x32x32xf32, #tpu.memory_space<vmem>>, vector<1x32x32xf32>
    %17 = vector.shape_cast %16 : vector<1x32x32xf32> to vector<32x32xf32>
    %cst_14 = arith.constant dense<0.000000e+00> : vector<16x32xf32>
    %18 = tpu.matmul %9, %17, %cst_14 {dimension_numbers = #tpu.dot_dimension_numbers<[1], [0], [0], [1], [0, 0, 1, 1], [], []>} : vector<16x32xf32>, vector<32x32xf32>, vector<16x32xf32> -> vector<16x32xf32>
    %19 = tpu.iota {dimensions = array<i32: 1>} : vector<1x8xi32>
    %20 = vector.extract_strided_slice %12 {offsets = [0, 0], sizes = [8, 32], strides = [1, 1]} : vector<16x32xf32> to vector<8x32xf32>
    %21 = vector.extract_strided_slice %15 {offsets = [0, 0], sizes = [8, 32], strides = [1, 1]} : vector<16x32xf32> to vector<8x32xf32>
    %22 = vector.extract_strided_slice %18 {offsets = [0, 0], sizes = [8, 32], strides = [1, 1]} : vector<16x32xf32> to vector<8x32xf32>
    %cst_15 = arith.constant dense<0.000000e+00> : vector<8x8xf32>
    %23 = tpu.matmul %20, %21, %cst_15 {dimension_numbers = #tpu.dot_dimension_numbers<[1], [1], [0], [0], [0, 0, 1, 0], [], []>} : vector<8x32xf32>, vector<8x32xf32>, vector<8x8xf32> -> vector<8x8xf32>
    %cst_16 = arith.constant 0.176776692 : f32
    %24 = vector.broadcast %cst_16 : f32 to vector<8x8xf32>
    %25 = arith.mulf %23, %24 : vector<8x8xf32>
    %c0_i32 = arith.constant 0 : i32
    %26 = vector.broadcast %c0_i32 : i32 to vector<1x8xi32>
    %c0_i32_17 = arith.constant 0 : i32
    %27 = vector.broadcast %c0_i32_17 : i32 to vector<1x8xi32>
    %28 = arith.cmpi eq, %19, %27 : vector<1x8xi32>
    %c0_18 = arith.constant 0 : index
    %c0_19 = arith.constant 0 : index
    %29 = memref.load %arg1[%c0_18, %c0_19] : memref<2x8xi32, #tpu.memory_space<smem>>
    %c0_i32_20 = arith.constant 0 : i32
    %30 = arith.cmpi eq, %29, %c0_i32_20 : i32
    %31 = arith.extui %30 : i1 to i32
    %c0_i32_21 = arith.constant 0 : i32
    %32 = vector.broadcast %31 : i32 to vector<1x8xi32>
    %33 = vector.broadcast %c0_i32_21 : i32 to vector<1x8xi32>
    %34 = arith.select %28, %32, %33 : vector<1x8xi1>, vector<1x8xi32>
    %35 = arith.addi %26, %34 : vector<1x8xi32>
    %c1_i32 = arith.constant 1 : i32
    %36 = vector.broadcast %c1_i32 : i32 to vector<1x8xi32>
    %37 = arith.cmpi eq, %19, %36 : vector<1x8xi32>
    %c0_22 = arith.constant 0 : index
    %c1_23 = arith.constant 1 : index
    %38 = memref.load %arg1[%c0_22, %c1_23] : memref<2x8xi32, #tpu.memory_space<smem>>
    %c0_i32_24 = arith.constant 0 : i32
    %39 = arith.cmpi eq, %38, %c0_i32_24 : i32
    %40 = arith.extui %39 : i1 to i32
    %c0_i32_25 = arith.constant 0 : i32
    %41 = vector.broadcast %40 : i32 to vector<1x8xi32>
    %42 = vector.broadcast %c0_i32_25 : i32 to vector<1x8xi32>
    %43 = arith.select %37, %41, %42 : vector<1x8xi1>, vector<1x8xi32>
    %44 = arith.addi %35, %43 : vector<1x8xi32>
    %c2_i32 = arith.constant 2 : i32
    %45 = vector.broadcast %c2_i32 : i32 to vector<1x8xi32>
    %46 = arith.cmpi eq, %19, %45 : vector<1x8xi32>
    %c0_26 = arith.constant 0 : index
    %c2_27 = arith.constant 2 : index
    %47 = memref.load %arg1[%c0_26, %c2_27] : memref<2x8xi32, #tpu.memory_space<smem>>
    %c0_i32_28 = arith.constant 0 : i32
    %48 = arith.cmpi eq, %47, %c0_i32_28 : i32
    %49 = arith.extui %48 : i1 to i32
    %c0_i32_29 = arith.constant 0 : i32
    %50 = vector.broadcast %49 : i32 to vector<1x8xi32>
    %51 = vector.broadcast %c0_i32_29 : i32 to vector<1x8xi32>
    %52 = arith.select %46, %50, %51 : vector<1x8xi1>, vector<1x8xi32>
    %53 = arith.addi %44, %52 : vector<1x8xi32>
    %c3_i32 = arith.constant 3 : i32
    %54 = vector.broadcast %c3_i32 : i32 to vector<1x8xi32>
    %55 = arith.cmpi eq, %19, %54 : vector<1x8xi32>
    %c0_30 = arith.constant 0 : index
    %c3 = arith.constant 3 : index
    %56 = memref.load %arg1[%c0_30, %c3] : memref<2x8xi32, #tpu.memory_space<smem>>
    %c0_i32_31 = arith.constant 0 : i32
    %57 = arith.cmpi eq, %56, %c0_i32_31 : i32
    %58 = arith.extui %57 : i1 to i32
    %c0_i32_32 = arith.constant 0 : i32
    %59 = vector.broadcast %58 : i32 to vector<1x8xi32>
    %60 = vector.broadcast %c0_i32_32 : i32 to vector<1x8xi32>
    %61 = arith.select %55, %59, %60 : vector<1x8xi1>, vector<1x8xi32>
    %62 = arith.addi %53, %61 : vector<1x8xi32>
    %c4_i32 = arith.constant 4 : i32
    %63 = vector.broadcast %c4_i32 : i32 to vector<1x8xi32>
    %64 = arith.cmpi eq, %19, %63 : vector<1x8xi32>
    %c0_33 = arith.constant 0 : index
    %c4 = arith.constant 4 : index
    %65 = memref.load %arg1[%c0_33, %c4] : memref<2x8xi32, #tpu.memory_space<smem>>
    %c0_i32_34 = arith.constant 0 : i32
    %66 = arith.cmpi eq, %65, %c0_i32_34 : i32
    %67 = arith.extui %66 : i1 to i32
    %c0_i32_35 = arith.constant 0 : i32
    %68 = vector.broadcast %67 : i32 to vector<1x8xi32>
    %69 = vector.broadcast %c0_i32_35 : i32 to vector<1x8xi32>
    %70 = arith.select %64, %68, %69 : vector<1x8xi1>, vector<1x8xi32>
    %71 = arith.addi %62, %70 : vector<1x8xi32>
    %c5_i32 = arith.constant 5 : i32
    %72 = vector.broadcast %c5_i32 : i32 to vector<1x8xi32>
    %73 = arith.cmpi eq, %19, %72 : vector<1x8xi32>
    %c0_36 = arith.constant 0 : index
    %c5 = arith.constant 5 : index
    %74 = memref.load %arg1[%c0_36, %c5] : memref<2x8xi32, #tpu.memory_space<smem>>
    %c0_i32_37 = arith.constant 0 : i32
    %75 = arith.cmpi eq, %74, %c0_i32_37 : i32
    %76 = arith.extui %75 : i1 to i32
    %c0_i32_38 = arith.constant 0 : i32
    %77 = vector.broadcast %76 : i32 to vector<1x8xi32>
    %78 = vector.broadcast %c0_i32_38 : i32 to vector<1x8xi32>
    %79 = arith.select %73, %77, %78 : vector<1x8xi1>, vector<1x8xi32>
    %80 = arith.addi %71, %79 : vector<1x8xi32>
    %c6_i32 = arith.constant 6 : i32
    %81 = vector.broadcast %c6_i32 : i32 to vector<1x8xi32>
    %82 = arith.cmpi eq, %19, %81 : vector<1x8xi32>
    %c0_39 = arith.constant 0 : index
    %c6 = arith.constant 6 : index
    %83 = memref.load %arg1[%c0_39, %c6] : memref<2x8xi32, #tpu.memory_space<smem>>
    %c0_i32_40 = arith.constant 0 : i32
    %84 = arith.cmpi eq, %83, %c0_i32_40 : i32
    %85 = arith.extui %84 : i1 to i32
    %c0_i32_41 = arith.constant 0 : i32
    %86 = vector.broadcast %85 : i32 to vector<1x8xi32>
    %87 = vector.broadcast %c0_i32_41 : i32 to vector<1x8xi32>
    %88 = arith.select %82, %86, %87 : vector<1x8xi1>, vector<1x8xi32>
    %89 = arith.addi %80, %88 : vector<1x8xi32>
    %c7_i32 = arith.constant 7 : i32
    %90 = vector.broadcast %c7_i32 : i32 to vector<1x8xi32>
    %91 = arith.cmpi eq, %19, %90 : vector<1x8xi32>
    %c0_42 = arith.constant 0 : index
    %c7 = arith.constant 7 : index
    %92 = memref.load %arg1[%c0_42, %c7] : memref<2x8xi32, #tpu.memory_space<smem>>
    %c0_i32_43 = arith.constant 0 : i32
    %93 = arith.cmpi eq, %92, %c0_i32_43 : i32
    %94 = arith.extui %93 : i1 to i32
    %c0_i32_44 = arith.constant 0 : i32
    %95 = vector.broadcast %94 : i32 to vector<1x8xi32>
    %96 = vector.broadcast %c0_i32_44 : i32 to vector<1x8xi32>
    %97 = arith.select %91, %95, %96 : vector<1x8xi1>, vector<1x8xi32>
    %98 = arith.addi %89, %97 : vector<1x8xi32>
    %99 = arith.sitofp %98 : vector<1x8xi32> to vector<1x8xf32>
    %cst_45 = arith.constant -1.000000e+09 : f32
    %100 = vector.broadcast %cst_45 : f32 to vector<1x8xf32>
    %101 = arith.mulf %99, %100 : vector<1x8xf32>
    %102 = vector.broadcast %101 : vector<1x8xf32> to vector<8x8xf32>
    %103 = arith.addf %25, %102 : vector<8x8xf32>
    %cst_46 = arith.constant dense<0xFF800000> : vector<8xf32>
    %104 = vector.multi_reduction <maximumf>, %103, %cst_46 [1] : vector<8x8xf32> to vector<8xf32>
    %105 = vector.shape_cast %104 : vector<8xf32> to vector<8x1xf32>
    %106 = vector.broadcast %105 : vector<8x1xf32> to vector<8x8xf32>
    %107 = arith.subf %103, %106 : vector<8x8xf32>
    %108 = math.exp %107 : vector<8x8xf32>
    %cst_47 = arith.constant dense<0.000000e+00> : vector<8xf32>
    %109 = vector.multi_reduction <add>, %108, %cst_47 [1] : vector<8x8xf32> to vector<8xf32>
    %110 = vector.shape_cast %109 : vector<8xf32> to vector<8x1xf32>
    %111 = tpu.reciprocal %110 {approx = true} : vector<8x1xf32> -> vector<8x1xf32>
    %112 = vector.broadcast %111 : vector<8x1xf32> to vector<8x8xf32>
    %113 = arith.mulf %108, %112 : vector<8x8xf32>
    %cst_48 = arith.constant dense<0.000000e+00> : vector<8x32xf32>
    %114 = tpu.matmul %113, %22, %cst_48 {dimension_numbers = #tpu.dot_dimension_numbers<[1], [0], [0], [1], [0, 0, 1, 1], [], []>} : vector<8x8xf32>, vector<8x32xf32>, vector<8x32xf32> -> vector<8x32xf32>
    %115 = vector.extract_strided_slice %12 {offsets = [8, 0], sizes = [8, 32], strides = [1, 1]} : vector<16x32xf32> to vector<8x32xf32>
    %116 = vector.extract_strided_slice %15 {offsets = [8, 0], sizes = [8, 32], strides = [1, 1]} : vector<16x32xf32> to vector<8x32xf32>
    %117 = vector.extract_strided_slice %18 {offsets = [8, 0], sizes = [8, 32], strides = [1, 1]} : vector<16x32xf32> to vector<8x32xf32>
    %cst_49 = arith.constant dense<0.000000e+00> : vector<8x8xf32>
    %118 = tpu.matmul %115, %116, %cst_49 {dimension_numbers = #tpu.dot_dimension_numbers<[1], [1], [0], [0], [0, 0, 1, 0], [], []>} : vector<8x32xf32>, vector<8x32xf32>, vector<8x8xf32> -> vector<8x8xf32>
    %cst_50 = arith.constant 0.176776692 : f32
    %119 = vector.broadcast %cst_50 : f32 to vector<8x8xf32>
    %120 = arith.mulf %118, %119 : vector<8x8xf32>
    %c0_i32_51 = arith.constant 0 : i32
    %121 = vector.broadcast %c0_i32_51 : i32 to vector<1x8xi32>
    %c0_i32_52 = arith.constant 0 : i32
    %122 = vector.broadcast %c0_i32_52 : i32 to vector<1x8xi32>
    %123 = arith.cmpi eq, %19, %122 : vector<1x8xi32>
    %c1_53 = arith.constant 1 : index
    %c0_54 = arith.constant 0 : index
    %124 = memref.load %arg1[%c1_53, %c0_54] : memref<2x8xi32, #tpu.memory_space<smem>>
    %c0_i32_55 = arith.constant 0 : i32
    %125 = arith.cmpi eq, %124, %c0_i32_55 : i32
    %126 = arith.extui %125 : i1 to i32
    %c0_i32_56 = arith.constant 0 : i32
    %127 = vector.broadcast %126 : i32 to vector<1x8xi32>
    %128 = vector.broadcast %c0_i32_56 : i32 to vector<1x8xi32>
    %129 = arith.select %123, %127, %128 : vector<1x8xi1>, vector<1x8xi32>
    %130 = arith.addi %121, %129 : vector<1x8xi32>
    %c1_i32_57 = arith.constant 1 : i32
    %131 = vector.broadcast %c1_i32_57 : i32 to vector<1x8xi32>
    %132 = arith.cmpi eq, %19, %131 : vector<1x8xi32>
    %c1_58 = arith.constant 1 : index
    %c1_59 = arith.constant 1 : index
    %133 = memref.load %arg1[%c1_58, %c1_59] : memref<2x8xi32, #tpu.memory_space<smem>>
    %c0_i32_60 = arith.constant 0 : i32
    %134 = arith.cmpi eq, %133, %c0_i32_60 : i32
    %135 = arith.extui %134 : i1 to i32
    %c0_i32_61 = arith.constant 0 : i32
    %136 = vector.broadcast %135 : i32 to vector<1x8xi32>
    %137 = vector.broadcast %c0_i32_61 : i32 to vector<1x8xi32>
    %138 = arith.select %132, %136, %137 : vector<1x8xi1>, vector<1x8xi32>
    %139 = arith.addi %130, %138 : vector<1x8xi32>
    %c2_i32_62 = arith.constant 2 : i32
    %140 = vector.broadcast %c2_i32_62 : i32 to vector<1x8xi32>
    %141 = arith.cmpi eq, %19, %140 : vector<1x8xi32>
    %c1_63 = arith.constant 1 : index
    %c2_64 = arith.constant 2 : index
    %142 = memref.load %arg1[%c1_63, %c2_64] : memref<2x8xi32, #tpu.memory_space<smem>>
    %c0_i32_65 = arith.constant 0 : i32
    %143 = arith.cmpi eq, %142, %c0_i32_65 : i32
    %144 = arith.extui %143 : i1 to i32
    %c0_i32_66 = arith.constant 0 : i32
    %145 = vector.broadcast %144 : i32 to vector<1x8xi32>
    %146 = vector.broadcast %c0_i32_66 : i32 to vector<1x8xi32>
    %147 = arith.select %141, %145, %146 : vector<1x8xi1>, vector<1x8xi32>
    %148 = arith.addi %139, %147 : vector<1x8xi32>
    %c3_i32_67 = arith.constant 3 : i32
    %149 = vector.broadcast %c3_i32_67 : i32 to vector<1x8xi32>
    %150 = arith.cmpi eq, %19, %149 : vector<1x8xi32>
    %c1_68 = arith.constant 1 : index
    %c3_69 = arith.constant 3 : index
    %151 = memref.load %arg1[%c1_68, %c3_69] : memref<2x8xi32, #tpu.memory_space<smem>>
    %c0_i32_70 = arith.constant 0 : i32
    %152 = arith.cmpi eq, %151, %c0_i32_70 : i32
    %153 = arith.extui %152 : i1 to i32
    %c0_i32_71 = arith.constant 0 : i32
    %154 = vector.broadcast %153 : i32 to vector<1x8xi32>
    %155 = vector.broadcast %c0_i32_71 : i32 to vector<1x8xi32>
    %156 = arith.select %150, %154, %155 : vector<1x8xi1>, vector<1x8xi32>
    %157 = arith.addi %148, %156 : vector<1x8xi32>
    %c4_i32_72 = arith.constant 4 : i32
    %158 = vector.broadcast %c4_i32_72 : i32 to vector<1x8xi32>
    %159 = arith.cmpi eq, %19, %158 : vector<1x8xi32>
    %c1_73 = arith.constant 1 : index
    %c4_74 = arith.constant 4 : index
    %160 = memref.load %arg1[%c1_73, %c4_74] : memref<2x8xi32, #tpu.memory_space<smem>>
    %c0_i32_75 = arith.constant 0 : i32
    %161 = arith.cmpi eq, %160, %c0_i32_75 : i32
    %162 = arith.extui %161 : i1 to i32
    %c0_i32_76 = arith.constant 0 : i32
    %163 = vector.broadcast %162 : i32 to vector<1x8xi32>
    %164 = vector.broadcast %c0_i32_76 : i32 to vector<1x8xi32>
    %165 = arith.select %159, %163, %164 : vector<1x8xi1>, vector<1x8xi32>
    %166 = arith.addi %157, %165 : vector<1x8xi32>
    %c5_i32_77 = arith.constant 5 : i32
    %167 = vector.broadcast %c5_i32_77 : i32 to vector<1x8xi32>
    %168 = arith.cmpi eq, %19, %167 : vector<1x8xi32>
    %c1_78 = arith.constant 1 : index
    %c5_79 = arith.constant 5 : index
    %169 = memref.load %arg1[%c1_78, %c5_79] : memref<2x8xi32, #tpu.memory_space<smem>>
    %c0_i32_80 = arith.constant 0 : i32
    %170 = arith.cmpi eq, %169, %c0_i32_80 : i32
    %171 = arith.extui %170 : i1 to i32
    %c0_i32_81 = arith.constant 0 : i32
    %172 = vector.broadcast %171 : i32 to vector<1x8xi32>
    %173 = vector.broadcast %c0_i32_81 : i32 to vector<1x8xi32>
    %174 = arith.select %168, %172, %173 : vector<1x8xi1>, vector<1x8xi32>
    %175 = arith.addi %166, %174 : vector<1x8xi32>
    %c6_i32_82 = arith.constant 6 : i32
    %176 = vector.broadcast %c6_i32_82 : i32 to vector<1x8xi32>
    %177 = arith.cmpi eq, %19, %176 : vector<1x8xi32>
    %c1_83 = arith.constant 1 : index
    %c6_84 = arith.constant 6 : index
    %178 = memref.load %arg1[%c1_83, %c6_84] : memref<2x8xi32, #tpu.memory_space<smem>>
    %c0_i32_85 = arith.constant 0 : i32
    %179 = arith.cmpi eq, %178, %c0_i32_85 : i32
    %180 = arith.extui %179 : i1 to i32
    %c0_i32_86 = arith.constant 0 : i32
    %181 = vector.broadcast %180 : i32 to vector<1x8xi32>
    %182 = vector.broadcast %c0_i32_86 : i32 to vector<1x8xi32>
    %183 = arith.select %177, %181, %182 : vector<1x8xi1>, vector<1x8xi32>
    %184 = arith.addi %175, %183 : vector<1x8xi32>
    %c7_i32_87 = arith.constant 7 : i32
    %185 = vector.broadcast %c7_i32_87 : i32 to vector<1x8xi32>
    %186 = arith.cmpi eq, %19, %185 : vector<1x8xi32>
    %c1_88 = arith.constant 1 : index
    %c7_89 = arith.constant 7 : index
    %187 = memref.load %arg1[%c1_88, %c7_89] : memref<2x8xi32, #tpu.memory_space<smem>>
    %c0_i32_90 = arith.constant 0 : i32
    %188 = arith.cmpi eq, %187, %c0_i32_90 : i32
    %189 = arith.extui %188 : i1 to i32
    %c0_i32_91 = arith.constant 0 : i32
    %190 = vector.broadcast %189 : i32 to vector<1x8xi32>
    %191 = vector.broadcast %c0_i32_91 : i32 to vector<1x8xi32>
    %192 = arith.select %186, %190, %191 : vector<1x8xi1>, vector<1x8xi32>
    %193 = arith.addi %184, %192 : vector<1x8xi32>
    %194 = arith.sitofp %193 : vector<1x8xi32> to vector<1x8xf32>
    %cst_92 = arith.constant -1.000000e+09 : f32
    %195 = vector.broadcast %cst_92 : f32 to vector<1x8xf32>
    %196 = arith.mulf %194, %195 : vector<1x8xf32>
    %197 = vector.broadcast %196 : vector<1x8xf32> to vector<8x8xf32>
    %198 = arith.addf %120, %197 : vector<8x8xf32>
    %cst_93 = arith.constant dense<0xFF800000> : vector<8xf32>
    %199 = vector.multi_reduction <maximumf>, %198, %cst_93 [1] : vector<8x8xf32> to vector<8xf32>
    %200 = vector.shape_cast %199 : vector<8xf32> to vector<8x1xf32>
    %201 = vector.broadcast %200 : vector<8x1xf32> to vector<8x8xf32>
    %202 = arith.subf %198, %201 : vector<8x8xf32>
    %203 = math.exp %202 : vector<8x8xf32>
    %cst_94 = arith.constant dense<0.000000e+00> : vector<8xf32>
    %204 = vector.multi_reduction <add>, %203, %cst_94 [1] : vector<8x8xf32> to vector<8xf32>
    %205 = vector.shape_cast %204 : vector<8xf32> to vector<8x1xf32>
    %206 = tpu.reciprocal %205 {approx = true} : vector<8x1xf32> -> vector<8x1xf32>
    %207 = vector.broadcast %206 : vector<8x1xf32> to vector<8x8xf32>
    %208 = arith.mulf %203, %207 : vector<8x8xf32>
    %cst_95 = arith.constant dense<0.000000e+00> : vector<8x32xf32>
    %209 = tpu.matmul %208, %117, %cst_95 {dimension_numbers = #tpu.dot_dimension_numbers<[1], [0], [0], [1], [0, 0, 1, 1], [], []>} : vector<8x8xf32>, vector<8x32xf32>, vector<8x32xf32> -> vector<8x32xf32>
    %210 = tpu.concatenate %114, %209 in 0 : vector<8x32xf32>, vector<8x32xf32> -> vector<16x32xf32>
    %c0_96 = arith.constant 0 : index
    %c0_97 = arith.constant 0 : index
    %211 = vector.load %arg6[%c0_96, %c0_97] : memref<32x32xf32, #tpu.memory_space<vmem>>, vector<32x32xf32>
    %cst_98 = arith.constant dense<0.000000e+00> : vector<16x32xf32>
    %212 = tpu.matmul %210, %211, %cst_98 {dimension_numbers = #tpu.dot_dimension_numbers<[1], [0], [0], [1], [0, 0, 1, 1], [], []>} : vector<16x32xf32>, vector<32x32xf32>, vector<16x32xf32> -> vector<16x32xf32>
    %213 = arith.addf %9, %212 : vector<16x32xf32>
    %c0_99 = arith.constant 0 : index
    %c0_100 = arith.constant 0 : index
    %214 = vector.load %arg7[%c0_99, %c0_100] : memref<1x32xf32, #tpu.memory_space<vmem>>, vector<1x32xf32>
    %c0_101 = arith.constant 0 : index
    %c0_102 = arith.constant 0 : index
    %215 = vector.load %arg8[%c0_101, %c0_102] : memref<1x32xf32, #tpu.memory_space<vmem>>, vector<1x32xf32>
    %cst_103 = arith.constant dense<0.000000e+00> : vector<16xf32>
    %216 = vector.multi_reduction <add>, %213, %cst_103 [1] : vector<16x32xf32> to vector<16xf32>
    %217 = vector.shape_cast %216 : vector<16xf32> to vector<16x1xf32>
    %cst_104 = arith.constant 3.200000e+01 : f32
    %218 = vector.broadcast %cst_104 : f32 to vector<16x1xf32>
    %219 = arith.divf %217, %218 : vector<16x1xf32>
    %220 = vector.broadcast %219 : vector<16x1xf32> to vector<16x32xf32>
    %221 = arith.subf %213, %220 : vector<16x32xf32>
    %222 = arith.mulf %221, %221 : vector<16x32xf32>
    %cst_105 = arith.constant dense<0.000000e+00> : vector<16xf32>
    %223 = vector.multi_reduction <add>, %222, %cst_105 [1] : vector<16x32xf32> to vector<16xf32>
    %224 = vector.shape_cast %223 : vector<16xf32> to vector<16x1xf32>
    %cst_106 = arith.constant 3.200000e+01 : f32
    %225 = vector.broadcast %cst_106 : f32 to vector<16x1xf32>
    %226 = arith.divf %224, %225 : vector<16x1xf32>
    %227 = vector.broadcast %219 : vector<16x1xf32> to vector<16x32xf32>
    %228 = arith.subf %213, %227 : vector<16x32xf32>
    %cst_107 = arith.constant 9.99999974E-6 : f32
    %229 = vector.broadcast %cst_107 : f32 to vector<16x1xf32>
    %230 = arith.addf %226, %229 : vector<16x1xf32>
    %231 = math.rsqrt %230 : vector<16x1xf32>
    %232 = vector.broadcast %231 : vector<16x1xf32> to vector<16x32xf32>
    %233 = arith.mulf %228, %232 : vector<16x32xf32>
    %234 = vector.broadcast %214 : vector<1x32xf32> to vector<16x32xf32>
    %235 = arith.mulf %233, %234 : vector<16x32xf32>
    %236 = vector.broadcast %215 : vector<1x32xf32> to vector<16x32xf32>
    %237 = arith.addf %235, %236 : vector<16x32xf32>
    %c0_108 = arith.constant 0 : index
    %c0_109 = arith.constant 0 : index
    %238 = vector.load %arg9[%c0_108, %c0_109] : memref<32x64xf32, #tpu.memory_space<vmem>>, vector<32x64xf32>
    %cst_110 = arith.constant dense<0.000000e+00> : vector<16x64xf32>
    %239 = tpu.matmul %237, %238, %cst_110 {dimension_numbers = #tpu.dot_dimension_numbers<[1], [0], [0], [1], [0, 0, 1, 1], [], []>} : vector<16x32xf32>, vector<32x64xf32>, vector<16x64xf32> -> vector<16x64xf32>
    %c0_111 = arith.constant 0 : index
    %c0_112 = arith.constant 0 : index
    %240 = vector.load %arg10[%c0_111, %c0_112] : memref<1x64xf32, #tpu.memory_space<vmem>>, vector<1x64xf32>
    %241 = vector.broadcast %240 : vector<1x64xf32> to vector<16x64xf32>
    %242 = arith.addf %239, %241 : vector<16x64xf32>
    %cst_113 = arith.constant 0.000000e+00 : f32
    %243 = vector.broadcast %cst_113 : f32 to vector<16x64xf32>
    %244 = arith.maximumf %242, %243 : vector<16x64xf32>
    %c0_114 = arith.constant 0 : index
    %c0_115 = arith.constant 0 : index
    %245 = vector.load %arg11[%c0_114, %c0_115] : memref<64x32xf32, #tpu.memory_space<vmem>>, vector<64x32xf32>
    %cst_116 = arith.constant dense<0.000000e+00> : vector<16x32xf32>
    %246 = tpu.matmul %244, %245, %cst_116 {dimension_numbers = #tpu.dot_dimension_numbers<[1], [0], [0], [1], [0, 0, 1, 1], [], []>} : vector<16x64xf32>, vector<64x32xf32>, vector<16x32xf32> -> vector<16x32xf32>
    %c0_117 = arith.constant 0 : index
    %c0_118 = arith.constant 0 : index
    %247 = vector.load %arg12[%c0_117, %c0_118] : memref<1x32xf32, #tpu.memory_space<vmem>>, vector<1x32xf32>
    %248 = vector.broadcast %247 : vector<1x32xf32> to vector<16x32xf32>
    %249 = arith.addf %246, %248 : vector<16x32xf32>
    %250 = arith.addf %237, %249 : vector<16x32xf32>
    %c0_119 = arith.constant 0 : index
    %c0_120 = arith.constant 0 : index
    %251 = vector.load %arg13[%c0_119, %c0_120] : memref<1x32xf32, #tpu.memory_space<vmem>>, vector<1x32xf32>
    %c0_121 = arith.constant 0 : index
    %c0_122 = arith.constant 0 : index
    %252 = vector.load %arg14[%c0_121, %c0_122] : memref<1x32xf32, #tpu.memory_space<vmem>>, vector<1x32xf32>
    %cst_123 = arith.constant dense<0.000000e+00> : vector<16xf32>
    %253 = vector.multi_reduction <add>, %250, %cst_123 [1] : vector<16x32xf32> to vector<16xf32>
    %254 = vector.shape_cast %253 : vector<16xf32> to vector<16x1xf32>
    %cst_124 = arith.constant 3.200000e+01 : f32
    %255 = vector.broadcast %cst_124 : f32 to vector<16x1xf32>
    %256 = arith.divf %254, %255 : vector<16x1xf32>
    %257 = vector.broadcast %256 : vector<16x1xf32> to vector<16x32xf32>
    %258 = arith.subf %250, %257 : vector<16x32xf32>
    %259 = arith.mulf %258, %258 : vector<16x32xf32>
    %cst_125 = arith.constant dense<0.000000e+00> : vector<16xf32>
    %260 = vector.multi_reduction <add>, %259, %cst_125 [1] : vector<16x32xf32> to vector<16xf32>
    %261 = vector.shape_cast %260 : vector<16xf32> to vector<16x1xf32>
    %cst_126 = arith.constant 3.200000e+01 : f32
    %262 = vector.broadcast %cst_126 : f32 to vector<16x1xf32>
    %263 = arith.divf %261, %262 : vector<16x1xf32>
    %264 = vector.broadcast %256 : vector<16x1xf32> to vector<16x32xf32>
    %265 = arith.subf %250, %264 : vector<16x32xf32>
    %cst_127 = arith.constant 9.99999974E-6 : f32
    %266 = vector.broadcast %cst_127 : f32 to vector<16x1xf32>
    %267 = arith.addf %263, %266 : vector<16x1xf32>
    %268 = math.rsqrt %267 : vector<16x1xf32>
    %269 = vector.broadcast %268 : vector<16x1xf32> to vector<16x32xf32>
    %270 = arith.mulf %265, %269 : vector<16x32xf32>
    %271 = vector.broadcast %251 : vector<1x32xf32> to vector<16x32xf32>
    %272 = arith.mulf %270, %271 : vector<16x32xf32>
    %273 = vector.broadcast %252 : vector<1x32xf32> to vector<16x32xf32>
    %274 = arith.addf %272, %273 : vector<16x32xf32>
    %c0_128 = arith.constant 0 : index
    %c0_129 = arith.constant 0 : index
    %275 = vector.load %arg19[%c0_128, %c0_129] : memref<16x32xf32, #tpu.memory_space<vmem>>, vector<16x32xf32>
    tpu.vector_store %arg19[%c0_128, %c0_129], %274 {strides = array<i32>} : memref<16x32xf32, #tpu.memory_space<vmem>>, vector<16x32xf32>,
    %c0_130 = arith.constant 0 : index
    %c0_131 = arith.constant 0 : index
    %276 = vector.load %arg15[%c0_130, %c0_131] : memref<32x4xf32, #tpu.memory_space<vmem>>, vector<32x4xf32>
    %c0_132 = arith.constant 0 : index
    %c0_133 = arith.constant 0 : index
    %277 = vector.load %arg16[%c0_132, %c0_133] : memref<1x4xf32, #tpu.memory_space<vmem>>, vector<1x4xf32>
    %278 = tpu.iota {dimensions = array<i32: 1>} : vector<1x4xi32>
    %cst_134 = arith.constant 0.000000e+00 : f32
    %279 = vector.broadcast %cst_134 : f32 to vector<1x1xf32>
    %c0_135 = arith.constant 0 : index
    %c0_136 = arith.constant 0 : index
    %280 = memref.load %arg1[%c0_135, %c0_136] : memref<2x8xi32, #tpu.memory_space<smem>>
    %c0_i32_137 = arith.constant 0 : i32
    %281 = arith.cmpi ne, %280, %c0_i32_137 : i32
    %282 = arith.extui %281 : i1 to i32
    %c0_i32_138 = arith.constant 0 : i32
    %283 = arith.addi %c0_i32_138, %282 : i32
    %c0_139 = arith.constant 0 : index
    %c1_140 = arith.constant 1 : index
    %284 = memref.load %arg1[%c0_139, %c1_140] : memref<2x8xi32, #tpu.memory_space<smem>>
    %c0_i32_141 = arith.constant 0 : i32
    %285 = arith.cmpi ne, %284, %c0_i32_141 : i32
    %286 = arith.extui %285 : i1 to i32
    %287 = arith.addi %283, %286 : i32
    %c0_142 = arith.constant 0 : index
    %c2_143 = arith.constant 2 : index
    %288 = memref.load %arg1[%c0_142, %c2_143] : memref<2x8xi32, #tpu.memory_space<smem>>
    %c0_i32_144 = arith.constant 0 : i32
    %289 = arith.cmpi ne, %288, %c0_i32_144 : i32
    %290 = arith.extui %289 : i1 to i32
    %291 = arith.addi %287, %290 : i32
    %c0_145 = arith.constant 0 : index
    %c3_146 = arith.constant 3 : index
    %292 = memref.load %arg1[%c0_145, %c3_146] : memref<2x8xi32, #tpu.memory_space<smem>>
    %c0_i32_147 = arith.constant 0 : i32
    %293 = arith.cmpi ne, %292, %c0_i32_147 : i32
    %294 = arith.extui %293 : i1 to i32
    %295 = arith.addi %291, %294 : i32
    %c0_148 = arith.constant 0 : index
    %c4_149 = arith.constant 4 : index
    %296 = memref.load %arg1[%c0_148, %c4_149] : memref<2x8xi32, #tpu.memory_space<smem>>
    %c0_i32_150 = arith.constant 0 : i32
    %297 = arith.cmpi ne, %296, %c0_i32_150 : i32
    %298 = arith.extui %297 : i1 to i32
    %299 = arith.addi %295, %298 : i32
    %c0_151 = arith.constant 0 : index
    %c5_152 = arith.constant 5 : index
    %300 = memref.load %arg1[%c0_151, %c5_152] : memref<2x8xi32, #tpu.memory_space<smem>>
    %c0_i32_153 = arith.constant 0 : i32
    %301 = arith.cmpi ne, %300, %c0_i32_153 : i32
    %302 = arith.extui %301 : i1 to i32
    %303 = arith.addi %299, %302 : i32
    %c0_154 = arith.constant 0 : index
    %c6_155 = arith.constant 6 : index
    %304 = memref.load %arg1[%c0_154, %c6_155] : memref<2x8xi32, #tpu.memory_space<smem>>
    %c0_i32_156 = arith.constant 0 : i32
    %305 = arith.cmpi ne, %304, %c0_i32_156 : i32
    %306 = arith.extui %305 : i1 to i32
    %307 = arith.addi %303, %306 : i32
    %c0_157 = arith.constant 0 : index
    %c7_158 = arith.constant 7 : index
    %308 = memref.load %arg1[%c0_157, %c7_158] : memref<2x8xi32, #tpu.memory_space<smem>>
    %c0_i32_159 = arith.constant 0 : i32
    %309 = arith.cmpi ne, %308, %c0_i32_159 : i32
    %310 = arith.extui %309 : i1 to i32
    %311 = arith.addi %307, %310 : i32
    %c0_i32_160 = arith.constant 0 : i32
    %312 = arith.cmpi sgt, %311, %c0_i32_160 : i32
    %c1_i32_161 = arith.constant 1 : i32
    %313 = arith.subi %311, %c1_i32_161 : i32
    %c7_i32_162 = arith.constant 7 : i32
    %314 = arith.select %312, %313, %c7_i32_162 : i32
    %c0_i32_163 = arith.constant 0 : i32
    %315 = arith.addi %c0_i32_163, %314 : i32
    %316 = arith.index_cast %315 : i32 to index
    %c0_164 = arith.constant 0 : index
    %317 = vector.load %arg19[%316, %c0_164] : memref<16x32xf32, #tpu.memory_space<vmem>>, vector<1x32xf32>
    %cst_165 = arith.constant dense<0.000000e+00> : vector<1x4xf32>
    %318 = tpu.matmul %317, %276, %cst_165 {dimension_numbers = #tpu.dot_dimension_numbers<[1], [0], [0], [1], [0, 0, 1, 1], [], []>} : vector<1x32xf32>, vector<32x4xf32>, vector<1x4xf32> -> vector<1x4xf32>
    %319 = arith.addf %318, %277 : vector<1x4xf32>
    %cst_166 = arith.constant dense<0xFF800000> : vector<1xf32>
    %320 = vector.multi_reduction <maximumf>, %319, %cst_166 [1] : vector<1x4xf32> to vector<1xf32>
    %321 = vector.shape_cast %320 : vector<1xf32> to vector<1x1xf32>
    %322 = vector.broadcast %321 : vector<1x1xf32> to vector<1x4xf32>
    %323 = arith.subf %319, %322 : vector<1x4xf32>
    %324 = math.exp %323 : vector<1x4xf32>
    %cst_167 = arith.constant dense<0.000000e+00> : vector<1xf32>
    %325 = vector.multi_reduction <add>, %324, %cst_167 [1] : vector<1x4xf32> to vector<1xf32>
    %326 = vector.shape_cast %325 : vector<1xf32> to vector<1x1xf32>
    %327 = math.log %326 : vector<1x1xf32>
    %328 = arith.addf %327, %321 : vector<1x1xf32>
    %c0_168 = arith.constant 0 : index
    %329 = memref.load %arg2[%c0_168] : memref<2xi32, #tpu.memory_space<smem>>
    %330 = vector.broadcast %329 : i32 to vector<1x4xi32>
    %331 = arith.cmpi eq, %278, %330 : vector<1x4xi32>
    %cst_169 = arith.constant 0.000000e+00 : f32
    %332 = vector.broadcast %cst_169 : f32 to vector<1x4xf32>
    %333 = arith.select %331, %319, %332 : vector<1x4xi1>, vector<1x4xf32>
    %cst_170 = arith.constant dense<0.000000e+00> : vector<1xf32>
    %334 = vector.multi_reduction <add>, %333, %cst_170 [1] : vector<1x4xf32> to vector<1xf32>
    %335 = vector.shape_cast %334 : vector<1xf32> to vector<1x1xf32>
    %336 = arith.subf %328, %335 : vector<1x1xf32>
    %337 = arith.addf %279, %336 : vector<1x1xf32>
    %338 = vector.broadcast %321 : vector<1x1xf32> to vector<1x4xf32>
    %339 = arith.cmpf oeq, %319, %338 : vector<1x4xf32>
    %c4_i32_171 = arith.constant 4 : i32
    %340 = vector.broadcast %c4_i32_171 : i32 to vector<1x4xi32>
    %341 = arith.select %339, %278, %340 : vector<1x4xi1>, vector<1x4xi32>
    %cst_172 = arith.constant dense<2147483647> : vector<1xi32>
    %342 = vector.multi_reduction <minsi>, %341, %cst_172 [1] : vector<1x4xi32> to vector<1xi32>
    %343 = vector.shape_cast %342 : vector<1xi32> to vector<1x1xi32>
    %c0_173 = arith.constant 0 : index
    %c0_174 = arith.constant 0 : index
    %344 = vector.load %arg18[%c0_173, %c0_174] : memref<2x1xi32, #tpu.memory_space<vmem>>, vector<1x1xi32>
    tpu.vector_store %arg18[%c0_173, %c0_174], %343 {strides = array<i32>} : memref<2x1xi32, #tpu.memory_space<vmem>>, vector<1x1xi32>,
    %c1_175 = arith.constant 1 : index
    %c0_176 = arith.constant 0 : index
    %345 = memref.load %arg1[%c1_175, %c0_176] : memref<2x8xi32, #tpu.memory_space<smem>>
    %c0_i32_177 = arith.constant 0 : i32
    %346 = arith.cmpi ne, %345, %c0_i32_177 : i32
    %347 = arith.extui %346 : i1 to i32
    %c0_i32_178 = arith.constant 0 : i32
    %348 = arith.addi %c0_i32_178, %347 : i32
    %c1_179 = arith.constant 1 : index
    %c1_180 = arith.constant 1 : index
    %349 = memref.load %arg1[%c1_179, %c1_180] : memref<2x8xi32, #tpu.memory_space<smem>>
    %c0_i32_181 = arith.constant 0 : i32
    %350 = arith.cmpi ne, %349, %c0_i32_181 : i32
    %351 = arith.extui %350 : i1 to i32
    %352 = arith.addi %348, %351 : i32
    %c1_182 = arith.constant 1 : index
    %c2_183 = arith.constant 2 : index
    %353 = memref.load %arg1[%c1_182, %c2_183] : memref<2x8xi32, #tpu.memory_space<smem>>
    %c0_i32_184 = arith.constant 0 : i32
    %354 = arith.cmpi ne, %353, %c0_i32_184 : i32
    %355 = arith.extui %354 : i1 to i32
    %356 = arith.addi %352, %355 : i32
    %c1_185 = arith.constant 1 : index
    %c3_186 = arith.constant 3 : index
    %357 = memref.load %arg1[%c1_185, %c3_186] : memref<2x8xi32, #tpu.memory_space<smem>>
    %c0_i32_187 = arith.constant 0 : i32
    %358 = arith.cmpi ne, %357, %c0_i32_187 : i32
    %359 = arith.extui %358 : i1 to i32
    %360 = arith.addi %356, %359 : i32
    %c1_188 = arith.constant 1 : index
    %c4_189 = arith.constant 4 : index
    %361 = memref.load %arg1[%c1_188, %c4_189] : memref<2x8xi32, #tpu.memory_space<smem>>
    %c0_i32_190 = arith.constant 0 : i32
    %362 = arith.cmpi ne, %361, %c0_i32_190 : i32
    %363 = arith.extui %362 : i1 to i32
    %364 = arith.addi %360, %363 : i32
    %c1_191 = arith.constant 1 : index
    %c5_192 = arith.constant 5 : index
    %365 = memref.load %arg1[%c1_191, %c5_192] : memref<2x8xi32, #tpu.memory_space<smem>>
    %c0_i32_193 = arith.constant 0 : i32
    %366 = arith.cmpi ne, %365, %c0_i32_193 : i32
    %367 = arith.extui %366 : i1 to i32
    %368 = arith.addi %364, %367 : i32
    %c1_194 = arith.constant 1 : index
    %c6_195 = arith.constant 6 : index
    %369 = memref.load %arg1[%c1_194, %c6_195] : memref<2x8xi32, #tpu.memory_space<smem>>
    %c0_i32_196 = arith.constant 0 : i32
    %370 = arith.cmpi ne, %369, %c0_i32_196 : i32
    %371 = arith.extui %370 : i1 to i32
    %372 = arith.addi %368, %371 : i32
    %c1_197 = arith.constant 1 : index
    %c7_198 = arith.constant 7 : index
    %373 = memref.load %arg1[%c1_197, %c7_198] : memref<2x8xi32, #tpu.memory_space<smem>>
    %c0_i32_199 = arith.constant 0 : i32
    %374 = arith.cmpi ne, %373, %c0_i32_199 : i32
    %375 = arith.extui %374 : i1 to i32
    %376 = arith.addi %372, %375 : i32
    %c0_i32_200 = arith.constant 0 : i32
    %377 = arith.cmpi sgt, %376, %c0_i32_200 : i32
    %c1_i32_201 = arith.constant 1 : i32
    %378 = arith.subi %376, %c1_i32_201 : i32
    %c7_i32_202 = arith.constant 7 : i32
    %379 = arith.select %377, %378, %c7_i32_202 : i32
    %c8_i32 = arith.constant 8 : i32
    %380 = arith.addi %c8_i32, %379 : i32
    %381 = arith.index_cast %380 : i32 to index
    %c0_203 = arith.constant 0 : index
    %382 = vector.load %arg19[%381, %c0_203] : memref<16x32xf32, #tpu.memory_space<vmem>>, vector<1x32xf32>
    %cst_204 = arith.constant dense<0.000000e+00> : vector<1x4xf32>
    %383 = tpu.matmul %382, %276, %cst_204 {dimension_numbers = #tpu.dot_dimension_numbers<[1], [0], [0], [1], [0, 0, 1, 1], [], []>} : vector<1x32xf32>, vector<32x4xf32>, vector<1x4xf32> -> vector<1x4xf32>
    %384 = arith.addf %383, %277 : vector<1x4xf32>
    %cst_205 = arith.constant dense<0xFF800000> : vector<1xf32>
    %385 = vector.multi_reduction <maximumf>, %384, %cst_205 [1] : vector<1x4xf32> to vector<1xf32>
    %386 = vector.shape_cast %385 : vector<1xf32> to vector<1x1xf32>
    %387 = vector.broadcast %386 : vector<1x1xf32> to vector<1x4xf32>
    %388 = arith.subf %384, %387 : vector<1x4xf32>
    %389 = math.exp %388 : vector<1x4xf32>
    %cst_206 = arith.constant dense<0.000000e+00> : vector<1xf32>
    %390 = vector.multi_reduction <add>, %389, %cst_206 [1] : vector<1x4xf32> to vector<1xf32>
    %391 = vector.shape_cast %390 : vector<1xf32> to vector<1x1xf32>
    %392 = math.log %391 : vector<1x1xf32>
    %393 = arith.addf %392, %386 : vector<1x1xf32>
    %c1_207 = arith.constant 1 : index
    %394 = memref.load %arg2[%c1_207] : memref<2xi32, #tpu.memory_space<smem>>
    %395 = vector.broadcast %394 : i32 to vector<1x4xi32>
    %396 = arith.cmpi eq, %278, %395 : vector<1x4xi32>
    %cst_208 = arith.constant 0.000000e+00 : f32
    %397 = vector.broadcast %cst_208 : f32 to vector<1x4xf32>
    %398 = arith.select %396, %384, %397 : vector<1x4xi1>, vector<1x4xf32>
    %cst_209 = arith.constant dense<0.000000e+00> : vector<1xf32>
    %399 = vector.multi_reduction <add>, %398, %cst_209 [1] : vector<1x4xf32> to vector<1xf32>
    %400 = vector.shape_cast %399 : vector<1xf32> to vector<1x1xf32>
    %401 = arith.subf %393, %400 : vector<1x1xf32>
    %402 = arith.addf %337, %401 : vector<1x1xf32>
    %403 = vector.broadcast %386 : vector<1x1xf32> to vector<1x4xf32>
    %404 = arith.cmpf oeq, %384, %403 : vector<1x4xf32>
    %c4_i32_210 = arith.constant 4 : i32
    %405 = vector.broadcast %c4_i32_210 : i32 to vector<1x4xi32>
    %406 = arith.select %404, %278, %405 : vector<1x4xi1>, vector<1x4xi32>
    %cst_211 = arith.constant dense<2147483647> : vector<1xi32>
    %407 = vector.multi_reduction <minsi>, %406, %cst_211 [1] : vector<1x4xi32> to vector<1xi32>
    %408 = vector.shape_cast %407 : vector<1xi32> to vector<1x1xi32>
    %c1_212 = arith.constant 1 : index
    %c0_213 = arith.constant 0 : index
    %409 = vector.load %arg18[%c1_212, %c0_213] : memref<2x1xi32, #tpu.memory_space<vmem>>, vector<1x1xi32>
    tpu.vector_store %arg18[%c1_212, %c0_213], %408 {strides = array<i32>} : memref<2x1xi32, #tpu.memory_space<vmem>>, vector<1x1xi32>,
    %cst_214 = arith.constant 5.000000e-01 : f32
    %410 = vector.broadcast %cst_214 : f32 to vector<1x1xf32>
    %411 = arith.mulf %402, %410 : vector<1x1xf32>
    %c0_215 = arith.constant 0 : index
    %c0_216 = arith.constant 0 : index
    %412 = vector.load %arg17[%c0_215, %c0_216] : memref<1x1xf32, #tpu.memory_space<vmem>>, vector<1x1xf32>
    tpu.vector_store %arg17[%c0_215, %c0_216], %411 {strides = array<i32>} : memref<1x1xf32, #tpu.memory_space<vmem>>, vector<1x1xf32>,
    return
  }
}

</mosaic_0001>

<bundles_post_ra>
// kernel: classification_forward.1
= control target key start
LH: loop header
LB: loop body
LE: loop exit
PB: predicated region body
PF: predicated region fallthrough
CT: control target
= control target key end

     0   :  { %s2483_s0 = inlined_call_operand.vmem [shape: s32[16,1], index: 0, kind: input, shape index: {}]   ;;  %s2484_s1 = inlined_call_operand.vmem [shape: s32[2,8], index: 1, kind: input, shape index: {}]   ;;  %s2485_s2 = inlined_call_operand.vmem [shape: s32[2], index: 2, kind: input, shape index: {}]   ;;  %s2486_s3 = inlined_call_operand.vmem [shape: f32[64,32], index: 3, kind: input, shape index: {}]   ;;  %s2487_s4 = inlined_call_operand.vmem [shape: f32[16,32], index: 4, kind: input, shape index: {}]   ;;  %s2488_s5 = inlined_call_operand.vmem [shape: f32[3,32,32], index: 5, kind: input, shape index: {}]   ;;  %s2489_s6 = inlined_call_operand.vmem [shape: f32[32,32], index: 6, kind: input, shape index: {}]   ;;  %s2490_s7 = inlined_call_operand.vmem [shape: f32[1,32], index: 7, kind: input, shape index: {}]   ;;  %s2491_s8 = inlined_call_operand.vmem [shape: f32[1,32], index: 8, kind: input, shape index: {}]   ;;  %s2492_s9 = inlined_call_operand.vmem [shape: f32[32,64], index: 9, kind: input, shape index: {}]   ;;  %s2493_s10 = inlined_call_operand.vmem [shape: f32[1,64], index: 10, kind: input, shape index: {}]   ;;  %s2494_s11 = inlined_call_operand.vmem [shape: f32[64,32], index: 11, kind: input, shape index: {}]   ;;  %s2495_s12 = inlined_call_operand.vmem [shape: f32[1,32], index: 12, kind: input, shape index: {}]   ;;  %s2496_s13 = inlined_call_operand.vmem [shape: f32[1,32], index: 13, kind: input, shape index: {}]   ;;  %s2497_s14 = inlined_call_operand.vmem [shape: f32[1,32], index: 14, kind: input, shape index: {}]   ;;  %s2498_s15 = inlined_call_operand.vmem [shape: f32[32,4], index: 15, kind: input, shape index: {}]   ;;  %s2499_s16 = inlined_call_operand.vmem [shape: f32[1,4], index: 16, kind: input, shape index: {}]   ;;  %s2500_s17 = inlined_call_operand.hbm [shape: f32[1,1], index: 17, kind: output, shape index: {0}]   ;;  %s2501_s18 = inlined_call_operand.vmem [shape: s32[2,1], index: 18, kind: output, shape index: {1}]  }
   0x1   :  { %2507 = sst [smem:[#allocation14_spill]] %s2483_s0 }
   0x2   :  { %2508 = sst [smem:[#allocation15_spill]] %s2484_s1 }
   0x3   :  { %2509 = sst [smem:[#allocation16_spill]] %s2485_s2 }
   0x4   :  { %2510 = sst [smem:[#allocation17_spill]] %s2496_s13 }
   0x5   :  { %2511 = sst [smem:[#allocation18_spill]] %s2497_s14 }
   0x6   :  { %2512 = sst [smem:[#allocation19_spill]] %s2499_s16 }
   0x7   :  { %2513 = sst [smem:[#allocation20_spill]] %s2500_s17 }
   0x8   :  { %2514 = sst [smem:[#allocation21_spill]] %s2501_s18 }
   0x9   :  { %24 = vsyncpa [#allocation5], 0 }
   0xa   :  { %25 = vsyncpa [#allocation7], 0 }
   0xb   :  { %26 = vsyncpa [#allocation4], 0  ;;  %s2515_s29 = sld [smem:[#allocation15_spill]]  ;;  %s2516_s1 = sld [smem:[#allocation16_spill]] }
  0x11   :  { %s35_s30 = sshll.u32 %s2515_s29, 4  ;;  %s45_s20 = sshll.u32 %s2516_s1, 4  ;;  %s36_s30 = int_to_ptr.vmem [resolvable:$true] %s35_s30  ;;  %s46_s20 = int_to_ptr.vmem [resolvable:$true] %s45_s20 }
  0x12   :  { %s1959_s21 = scalar_lea.vmem %s36_s30, 32  ;;  %p1964_p1 = scmp.lt.s32.totalorder %s36_s30, %s36_s30 }
  0x13   :  { %p1960_p0 = scmp.ne.s32.totalorder %s36_s30, %s1959_s21  ;;  %p1965_p2 = scmp.lt.s32.totalorder %s1959_s21, %s1959_s21 }
  0x15   :  { %p1966_p3 = por %p1965_p2, %p1964_p1 }
  0x17   :  { %p1967_p4 = pnand %p1966_p3, %p1960_p0 }
  0x19   :  { %1970 = shalt.err (!%p1967_p4)
}
  0x1a   :  { %s2011_s22 = smov [#allocation3]   ;;  %s1971_s2 = scalar_lea.vmem %s46_s20, 16 }
  0x1b   :  { %38 = dma.vmem_to_smem %s36_s30, 32, %s2011_s22, [#allocation5]  }
  0x1c   :  { %p1972_p5 = scmp.ne.s32.totalorder %s46_s20, %s1971_s2  ;;  %p1976_p6 = scmp.lt.s32.totalorder %s46_s20, %s46_s20 }
  0x1d   :  { %p1977_p7 = scmp.lt.s32.totalorder %s1971_s2, %s1971_s2 }
  0x1f   :  { %p1978_p8 = por %p1977_p7, %p1976_p6 }
  0x21   :  { %p1979_p9 = pnand %p1978_p8, %p1972_p5 }
  0x23   :  { %1982 = shalt.err (!%p1979_p9)
}
  0x24   :  { %s2012_s23 = smov [#allocation6]  }
  0x25   :  { %48 = dma.vmem_to_smem %s46_s20, 16, %s2012_s23, [#allocation7]  }
  0x26   :  { %2005 = dma.done.wait [#allocation5], 32  }
  0x27   :  { %2006 = vsyncadd [#allocation5], 4294967264 }
  0x28   :  { %2007 = dma.done.wait [#allocation7], 16  }
  0x29   :  { %2008 = vsyncadd [#allocation7], 4294967280 }
  0x2a   :  { %83 = sfence }
  0x2b   :  { %s2517_s26 = sld [smem:[#allocation14_spill]]  ;;  %v100_v1 = vld [vmem:[%s2486_s3] sm:$0xff]  ;;  %v2013_v2 = vmov 0   ;;  %v101_v3 = vld [vmem:[%s2486_s3 + $0x8] sm:$0xff]  ;;  %v102_v4 = vld [vmem:[%s2486_s3 + $0x10] sm:$0xff]  ;;  %v86_v21 = vlaneseq  ;;  %vm110_vm0 = vcmask 523264  }
  0x2c   :  { %1934 = vset.pattern.permute.xlu0 %v2013_v2  ;;  %v103_v5 = vld [vmem:[%s2486_s3 + $0x18] sm:$0xff]  ;;  %v1843_v6 = vpack.c.bf16 %v101_v3, %v100_v1  ;;  %v104_v9 = vld [vmem:[%s2486_s3 + $0x20] sm:$0xff]  ;;  %v105_v10 = vld [vmem:[%s2486_s3 + $0x28] sm:$0xff]  ;;  %v2014_v24 = vmov 0.0   ;;  %vm196_vm3 = vcmask 261120   ;;  %vm2015_vm4 = vmmov 0  }
  0x2d   :  { %v1847_v7 = vpack.c.bf16 %v103_v5, %v102_v4  ;;  %v1851_v11 = vpack.c.bf16 %v105_v10, %v104_v9  ;;  %v106_v12 = vld [vmem:[%s2486_s3 + $0x30] sm:$0xff]  ;;  %v107_v13 = vld [vmem:[%s2486_s3 + $0x38] sm:$0xff]  ;;  %v192_v14 = vld [vmem:[%s2488_s5] sm:$0xff]  ;;  %v2161_v22 = vand.u32 127, %v86_v21  ;;  %s2235_s27 = sld [smem:[#allocation3 + $0x80]]  ;;  %s2237_s28 = sld [smem:[#allocation3 + $0x2]] }
  0x2e   :  { %1844 = vmatprep.subr.bf16.mxu0 %v1843_v6  ;;  %v193_v15 = vld [vmem:[%s2488_s5 + $0x8] sm:$0xff]  ;;  %v1855_v17 = vpack.c.bf16 %v107_v13, %v106_v12  ;;  %v1580_v18 = vld [vmem:[%s2488_s5 + $0x40] sm:$0xff]  ;;  %v194_v28 = vld [vmem:[%s2488_s5 + $0x10] sm:$0xff]  ;;  %s2239_s29 = sld [smem:[#allocation3 + $0x81]]  ;;  %s2241_s30 = sld [smem:[#allocation3 + $0x3]]  ;;  %vm573_vm13 = vcmask 64512  }
  0x2f   :  { %1846 = vmatpush3.bf16.msra.mxu0 %v1843_v6  ;;  %v1859_v16 = vpack.c.bf16 %v193_v15, %v192_v14  ;;  %v1581_v19 = vld [vmem:[%s2488_s5 + $0x48] sm:$0xff]  ;;  %v195_v29 = vld [vmem:[%s2488_s5 + $0x18] sm:$0xff]  ;;  %v1582_v31 = vld [vmem:[%s2488_s5 + $0x50] sm:$0xff]  ;;  %s2248_s0 = sld [smem:[#allocation3 + $0x83]]  ;;  %s2253_s20 = sld [smem:[#allocation3 + $0x4]]  ;;  %vm515_vm5 = vcmp.eq.s32.totalorder %v2161_v22, 0 }
  0x30   :  { %1848 = vmatprep.subr.bf16.mxu0 %v1847_v7  ;;  %v1875_v20 = vpack.c.bf16 %v1581_v19, %v1580_v18  ;;  %v1863_v30 = vpack.c.bf16 %v195_v29, %v194_v28  ;;  %v1583_v32 = vld [vmem:[%s2488_s5 + $0x58] sm:$0xff]  ;;  %v1574_v34 = vld [vmem:[%s2488_s5 + $0x20] sm:$0xff]  ;;  %v1575_v35 = vld [vmem:[%s2488_s5 + $0x28] sm:$0xff]  ;;  %s2256_s3 = sld [smem:[#allocation3 + $0x84]]  ;;  %s2260_s24 = sld [smem:[#allocation3 + $0x5]]  ;;  %vm521_vm6 = vcmp.eq.s32.totalorder %v2161_v22, 1 }
  0x31   :  { %v84_v0 = vld [vmem:[%s2517_s26] sm:$0xff]  ;;  %v85_v8 = vld [vmem:[%s2517_s26 + $0x8] sm:$0xff]  ;;  %1860 = vmatprep.subr.bf16.mxu1 %v1859_v16  ;;  %v1879_v33 = vpack.c.bf16 %v1583_v32, %v1582_v31  ;;  %v1867_v36 = vpack.c.bf16 %v1575_v35, %v1574_v34  ;;  %v1576_v40 = vld [vmem:[%s2488_s5 + $0x30] sm:$0xff]  ;;  %s2245_s26 = sld [smem:[#allocation3 + $0x82]]  ;;  %s2265_s25 = sld [smem:[#allocation3 + $0x85]]  ;;  %vm528_vm7 = vcmp.eq.s32.totalorder %v2161_v22, 2 }
  0x32   :  { %89 = vperm.xlu0 %1934, %v84_v0   ;;  %1862 = vmatpush3.bf16.msra.mxu1 %v1859_v16  ;;  %v108_v37 = vld [vmem:[%s2487_s4] sm:$0xff]  ;;  %v109_v38 = vld [vmem:[%s2487_s4 + $0x8] sm:$0xff]  ;;  %v1577_v41 = vld [vmem:[%s2488_s5 + $0x38] sm:$0xff]  ;;  %s2231_s4 = sld [smem:[#allocation3]]  ;;  %s2233_s5 = sld [smem:[#allocation3 + $0x1]]  ;;  %vm535_vm8 = vcmp.eq.s32.totalorder %v2161_v22, 3 }
  0x33   :  { %1850 = vmatpush3.bf16.msra.mxu0 %v1847_v7  ;;  %1864 = vmatprep.subr.bf16.mxu1 %v1863_v30  ;;  %v1871_v45 = vpack.c.bf16 %v1577_v41, %v1576_v40  ;;  %p736_p12 = scmp.eq.s32.totalorder %s2235_s27, 0  ;;  %p530_p13 = scmp.eq.s32.totalorder %s2237_s28, 0  ;;  %vm542_vm9 = vcmp.eq.s32.totalorder %v2161_v22, 4  ;;  %vm549_vm10 = vcmp.eq.s32.totalorder %v2161_v22, 5  ;;  %vm556_vm11 = vcmp.eq.s32.totalorder %v2161_v22, 6 }
  0x34   :  { %1852 = vmatprep.subr.bf16.mxu0 %v1851_v11  ;;  %p741_p0 = scmp.eq.s32.totalorder %s2239_s29, 0  ;;  %p537_p1 = scmp.eq.s32.totalorder %s2241_s30, 0  ;;  %vm563_vm12 = vcmp.eq.s32.totalorder %v2161_v22, 7  ;;  %vm1353_vm14 = vcmask 24576  }
  0x35   :  { %s531_s21 = scalar_select %p530_p13, 1, 0 }
  0x36   :  { %92 = vperm.xlu0 %1934, %v85_v8   ;;  %1866 = vmatpush3.bf16.msra.mxu1 %v1863_v30  ;;  %s737_s22 = scalar_select %p736_p12, 1, 0 }
  0x37   :  { %1854 = vmatpush3.bf16.msra.mxu0 %v1851_v11  ;;  %1868 = vmatprep.subr.bf16.mxu1 %v1867_v36  ;;  %s742_s2 = scalar_select %p741_p0, 1, 0  ;;  %v532_v58 = vstv %s531_s21 }
  0x38   :  { %1856 = vmatprep.subr.bf16.mxu0 %v1855_v17  ;;  %p517_p10 = scmp.eq.s32.totalorder %s2231_s4, 0  ;;  %p523_p11 = scmp.eq.s32.totalorder %s2233_s5, 0  ;;  %v738_v54 = vstv %s737_s22  ;;  %v533_v63 = vsel %vm528_vm7, %v532_v58, 0 }
  0x39   :  { %p747_p2 = scmp.eq.s32.totalorder %s2245_s26, 0  ;;  %p753_p3 = scmp.eq.s32.totalorder %s2248_s0, 0  ;;  %v743_v55 = vstv %s742_s2  ;;  %v739_v59 = vsel %vm515_vm5, %v738_v54, 0 }
  0x3a   :  { %s518_s19 = scalar_select %p517_p10, 1, 0  ;;  %v744_v60 = vsel %vm521_vm6, %v743_v55, 0 }
  0x3b   :  { %1858 = vmatpush3.bf16.msra.mxu0 %v1855_v17  ;;  %s524_s1 = scalar_select %p523_p11, 1, 0  ;;  %v745_v0 = vadd.s32 %v744_v60, %v739_v59 }
  0x3c   :  { %1876 = vmatprep.subr.bf16.mxu0 %v1875_v20  ;;  %s2258_s23 = scalar_select %p537_p1, 1, 0  ;;  %v519_v52 = vstv %s518_s19 }
  0x3d   :  { %v525_v53 = vstv %s524_s1  ;;  %s748_s18 = scalar_select %p747_p2, 1, 0  ;;  %v520_v56 = vsel %vm515_vm5, %v519_v52, 0  ;;  %vm1392_vm5 = vcmask 0  }
  0x3e   :  { %p544_p4 = scmp.eq.s32.totalorder %s2253_s20, 0  ;;  %s2268_s17 = sld [smem:[#allocation3 + $0x6]]  ;;  %v526_v57 = vsel %vm521_vm6, %v525_v53, 0  ;;  %v539_v1 = vstv %s2258_s23 }
  0x3f   :  { %s754_s16 = scalar_select %p753_p3, 1, 0  ;;  %v749_v61 = vstv %s748_s18  ;;  %v527_v62 = vadd.s32 %v526_v57, %v520_v56  ;;  %v540_v5 = vsel %vm535_vm8, %v539_v1, 0 }
  0x40   :  { %s2271_s19 = sld [smem:[#allocation3 + $0x86]]  ;;  %p759_p5 = scmp.eq.s32.totalorder %s2256_s3, 0  ;;  %v750_v2 = vsel %vm528_vm7, %v749_v61, 0 }
  0x41   :  { %s545_s1 = scalar_select %p544_p4, 1, 0  ;;  %v755_v3 = vstv %s754_s16  ;;  %v534_v4 = vadd.s32 %v533_v63, %v527_v62  ;;  %v751_v6 = vadd.s32 %v750_v2, %v745_v0  ;;  %v869_v63 = vld [vmem:[%s2489_s6] sm:$0xff]  ;;  %v870_v0 = vld [vmem:[%s2489_s6 + $0x8] sm:$0xff] }
  0x42   :  { %p551_p6 = scmp.eq.s32.totalorder %s2260_s24, 0  ;;  %s2275_s22 = sld [smem:[#allocation3 + $0x7]]  ;;  %v756_v8 = vsel %vm535_vm8, %v755_v3, 0  ;;  %v1883_v1 = vpack.c.bf16 %v870_v0, %v869_v63  ;;  %v1101_v0 = vld [vmem:[%s2494_s11 + $0x30] sm:$0xff] }
  0x43   :  { %p765_p7 = scmp.eq.s32.totalorder %s2265_s25, 0  ;;  %s2280_s21 = sld [smem:[#allocation3 + $0x87]]  ;;  %v546_v7 = vstv %s545_s1  ;;  %v541_v10 = vadd.s32 %v540_v5, %v534_v4  ;;  %v757_v12 = vadd.s32 %v756_v8, %v751_v6  ;;  %v871_v8 = vld [vmem:[%s2489_s6 + $0x10] sm:$0xff] }
  0x44   :  { %s760_s18 = scalar_select %p759_p5, 1, 0  ;;  %v547_v11 = vsel %vm542_vm9, %v546_v7, 0 }
  0x45   :  { %p558_p8 = scmp.eq.s32.totalorder %s2268_s17, 0  ;;  %v548_v16 = vadd.s32 %v547_v11, %v541_v10  ;;  %p1245_p12 = scmp.ne.s32.totalorder %s2231_s4, 0 }
  0x46   :  { %2518 = sst [smem:[#allocation12_spill]] %s2271_s19  ;;  %p771_p9 = scmp.eq.s32.totalorder %s2271_s19, 0  ;;  %v761_v9 = vstv %s760_s18 }
  0x47   :  { %s552_s2 = scalar_select %p551_p6, 1, 0  ;;  %v762_v14 = vsel %vm542_vm9, %v761_v9, 0  ;;  %v872_v9 = vld [vmem:[%s2489_s6 + $0x18] sm:$0xff] }
  0x48   :  { %s766_s23 = scalar_select %p765_p7, 1, 0  ;;  %v763_v18 = vadd.s32 %v762_v14, %v757_v12  ;;  %v1887_v10 = vpack.c.bf16 %v872_v9, %v871_v8 }
  0x49   :  { %2519 = sst [smem:[#allocation13_spill]] %s2280_s21  ;;  %v553_v13 = vstv %s552_s2  ;;  %p565_p10 = scmp.eq.s32.totalorder %s2275_s22, 0 }
  0x4a   :  { %s559_s14 = scalar_select %p558_p8, 1, 0  ;;  %v767_v15 = vstv %s766_s23  ;;  %v554_v17 = vsel %vm549_vm10, %v553_v13, 0 }
  0x4b   :  { %p777_p11 = scmp.eq.s32.totalorder %s2280_s21, 0  ;;  %p1248_p13 = scmp.ne.s32.totalorder %s2233_s5, 0 }
  0x4c   :  { %s772_s16 = scalar_select %p771_p9, 1, 0  ;;  %v560_v19 = vstv %s559_s14 }
  0x4d   :  { %s566_s1 = scalar_select %p565_p10, 1, 0 }
  0x4e   :  { %v773_v21 = vstv %s772_s16  ;;  %s778_s18 = scalar_select %p777_p11, 1, 0 }
  0x4f   :  { %v774_v28 = vsel %vm556_vm11, %v773_v21, 0  ;;  %p1252_p0 = scmp.ne.s32.totalorder %s2237_s28, 0  ;;  %p1256_p1 = scmp.ne.s32.totalorder %s2241_s30, 0 }
  0x50   :  { %v779_v29 = vstv %s778_s18  ;;  %p1260_p2 = scmp.ne.s32.totalorder %s2253_s20, 0  ;;  %p1264_p3 = scmp.ne.s32.totalorder %s2260_s24, 0 }
  0x51   :  { %s1253_s18 = scalar_select %p1252_p0, 1, 0 }
  0x52   :  { %p1268_p4 = scmp.ne.s32.totalorder %s2268_s17, 0  ;;  %p1395_p5 = scmp.ne.s32.totalorder %s2235_s27, 0 }
  0x53   :  { %s1261_s14 = scalar_select %p1260_p2, 1, 0 }
  0x54   :  { %p1398_p6 = scmp.ne.s32.totalorder %s2239_s29, 0  ;;  %p1272_p7 = scmp.ne.s32.totalorder %s2275_s22, 0 }
  0x55   :  { %s1396_s5 = scalar_select %p1395_p5, 1, 0 }
  0x56   :  { %p1402_p8 = scmp.ne.s32.totalorder %s2245_s26, 0  ;;  %p1406_p9 = scmp.ne.s32.totalorder %s2248_s0, 0 }
  0x57   :  { %s1399_s17 = scalar_select %p1398_p6, 1, 0 }
  0x58   :  { %s1273_s27 = scalar_select %p1272_p7, 1, 0 }
  0x59   :  { %s2520_s20 = sld [smem:[#allocation12_spill]]  ;;  %s1400_s29 = sadd.s32 %s1399_s17, %s1396_s5 }
  0x5a   :  { %s1403_s24 = scalar_select %p1402_p8, 1, 0 }
  0x5b   :  { %p1410_p10 = scmp.ne.s32.totalorder %s2256_s3, 0  ;;  %p1414_p11 = scmp.ne.s32.totalorder %s2265_s25, 0 }
  0x5c   :  { %s1407_s13 = scalar_select %p1406_p9, 1, 0 }
  0x5d   :  { %s1404_s2 = sadd.s32 %s1403_s24, %s1400_s29  ;;  %s2522_s19 = sld [smem:[#allocation17_spill]] }
  0x5e   :  { %s1411_s26 = scalar_select %p1410_p10, 1, 0 }
  0x5f   :  { %s1408_s21 = sadd.s32 %s1407_s13, %s1404_s2  ;;  %s1366_s24 = sld [smem:[#allocation6]] }
  0x60   :  { %s1415_s3 = scalar_select %p1414_p11, 1, 0 }
  0x61   :  { %s1639_s29 = sld [smem:[#allocation6 + $0x1]] }
  0xb1   :  { %v90_v23 = vpop.permute.xlu0 %89 }
  0xb2   :  { %vm94_vm1 = vcmp.eq.s32.totalorder %v2161_v22, %v90_v23  ;;  %v555_v23 = vadd.s32 %v554_v17, %v548_v16 }
  0xb3   :  { %v1568_v25 = vsel %vm94_vm1, 1.0, %v2014_v24 }
  0xb4   :  { %1724 = vmatprep.mubr.msk.f32.mxu0 %vm110_vm0, %v1568_v25  ;;  %v561_v25 = vsel %vm556_vm11, %v560_v19, 0 }
  0xb5   :  { %v93_v26 = vpop.permute.xlu0 %92  ;;  %v562_v30 = vadd.s32 %v561_v25, %v555_v23 }
  0xb6   :  { %vm95_vm2 = vcmp.eq.s32.totalorder %v2161_v22, %v93_v26 }
  0xb7   :  { %v1569_v27 = vsel %vm95_vm2, 1.0, %v2014_v24 }
  0xb8   :  { %1725 = vmatmul.mubr.msk.f32.vlgmr.msra.gmra.mrb[0].mxu0 %vm110_vm0, %v1569_v27  ;;  %v567_v27 = vstv %s566_s1  ;;  %s1246_s1 = scalar_select %p1245_p12, 1, 0 }
  0xb9   :  { %1878 = vmatpush3.bf16.msra.mxu0 %v1875_v20  ;;  %v768_v20 = vsel %vm549_vm10, %v767_v15, 0  ;;  %v568_v31 = vsel %vm563_vm12, %v567_v27, 0  ;;  %p1418_p12 = scmp.ne.s32.totalorder %s2520_s20, 0  ;;  %s2524_s20 = sld [smem:[#allocation19_spill]] }
  0xba   :  { %1880 = vmatprep.subr.bf16.mxu0 %v1879_v33  ;;  %v769_v26 = vadd.s32 %v768_v20, %v763_v18  ;;  %v569_v34 = vadd.s32 %v568_v31, %v562_v30  ;;  %v1002_v31 = vld [vmem:[%s2492_s9 + $0x8] sm:$0xff] }
  0xbc   :  { %v775_v32 = vadd.s32 %v774_v28, %v769_v26 }
  0xbd   :  { %1882 = vmatpush3.bf16.msra.mxu0 %v1879_v33  ;;  %v780_v33 = vsel %vm563_vm12, %v779_v29, 0 }
  0xbe   :  { %1770 = vmatprep.subr.mxu0 %v2014_v24  ;;  %v781_v35 = vadd.s32 %v780_v33, %v775_v32  ;;  %v1003_v33 = vld [vmem:[%s2492_s9 + $0x10] sm:$0xff] }
 0x18b   :  { %v1726_v39 = vpop.f32.mrb[0].mxu0 }
 0x18c   :  { %v183_v42 = vpop.f32.mrb[1].mxu0  ;;  %v2202_v44 = vadd.f32 %v1726_v39, %v109_v38 }
 0x18d   :  { %v2200_v43 = vadd.f32 %v183_v42, %v108_v37  ;;  %v782_v37 = vcvt.s32.f32 %v781_v35 }
 0x18f   :  { %1735 = vmatprep.mubr.msk.f32.mxu1 %vm196_vm3, %v2200_v43  ;;  %1757 = vmatprep.mubr.msk.f32.mxu0 %vm196_vm3, %v2200_v43  ;;  %v783_v42 = vmul.f32 -1e+09, %v782_v37  ;;  %v1096_v37 = vld [vmem:[%s2494_s11 + $0x8] sm:$0xff] }
 0x190   :  { %1736 = vmatmul.mubr.msk.f32.vlgmr.msra.gmra.mrb[0].mxu1 %vm196_vm3, %v2202_v44  ;;  %1758 = vmatmul.mubr.msk.f32.vlgmr.msra.gmra.mrb[2].mxu0 %vm196_vm3, %v2202_v44 }
 0x191   :  { %1870 = vmatpush3.bf16.msra.mxu1 %v1867_v36  ;;  %1746 = vmatprep.mubr.msk.f32.mxu1 %vm196_vm3, %v2200_v43  ;;  %v570_v36 = vcvt.s32.f32 %v569_v34  ;;  %v1004_v34 = vld [vmem:[%s2492_s9 + $0x18] sm:$0xff] }
 0x192   :  { %1872 = vmatprep.subr.bf16.mxu1 %v1871_v45  ;;  %1772 = vmatprep.mubr.msk.f32.mxu0 %vm2015_vm4, %v2014_v24  ;;  %v1895_v35 = vpack.c.bf16 %v1004_v34, %v1003_v33  ;;  %v1242_v33 = vld [vmem:[%s2498_s15 + $0x18] sm:$0xff] }
 0x193   :  { %v571_v39 = vmul.f32 -1e+09, %v570_v36  ;;  %v1095_v36 = vld [vmem:[%s2494_s11] sm:$0xff] }
 0x195   :  { %1874 = vmatpush3.bf16.msra.mxu1 %v1871_v45 }
 0x196   :  { %1760 = vmatprep.subr.mxu1 %v2014_v24 }
 0x198   :  { %1747 = vmatmul.mubr.msk.f32.vlgmr.msra.gmra.mrb[2].mxu1 %vm196_vm3, %v2202_v44 }
 0x199   :  { %1762 = vmatprep.mubr.msk.f32.mxu1 %vm2015_vm4, %v2014_v24 }
 0x263   :  { %v1737_v46 = vpop.f32.mrb[0].mxu1  ;;  %v2221_v47 = vpop.f32.mrb[2].mxu0 }
 0x264   :  { %v269_v48 = vpop.f32.mrb[1].mxu1  ;;  %v429_v49 = vpop.f32.mrb[3].mxu0 }
 0x26b   :  { %v1748_v50 = vpop.f32.mrb[2].mxu1 }
 0x26c   :  { %v349_v51 = vpop.f32.mrb[3].mxu1  ;;  %1771 = vmatpush3.xpose.msk.msra.mxu0 %vm196_vm3, %v1748_v50 }
 0x26d   :  { %1761 = vmatpush3.xpose.msk.msra.mxu1 %vm196_vm3, %v349_v51  ;;  %1884 = vmatprep.subr.bf16.mxu0 %v1883_v1 }
 0x26e   :  { %1765 = vmatprep.subr.mxu1 %v2014_v24 }
 0x26f   :  { %1773 = vmatmul.mubr.msk.f32.vlgmr.msra.gmra.mrb[4].mxu0 %vm196_vm3, %v1737_v46 }
 0x270   :  { %1763 = vmatmul.mubr.msk.f32.vlgmr.msra.gmra.mrb[4].mxu1 %vm196_vm3, %v269_v48  ;;  %1886 = vmatpush3.bf16.msra.mxu0 %v1883_v1  ;;  %v1102_v1 = vld [vmem:[%s2494_s11 + $0x38] sm:$0xff] }
 0x271   :  { %1766 = vmatpush3.msra.mxu1 %v429_v49  ;;  %1767 = vmatprep.mubr.msk.f32.mxu1 %vm2015_vm4, %v2014_v24 }
 0x272   :  { %1775 = vmatprep.subr.mxu1 %v2014_v24  ;;  %1888 = vmatprep.subr.bf16.mxu0 %v1887_v10 }
 0x274   :  { %1890 = vmatpush3.bf16.msra.mxu0 %v1887_v10  ;;  %v1614_v10 = vld [vmem:[%s2495_s12] ss:$0 sm:$0xff] }
 0x342   :  { %v730_v38 = vpop.f32.mrb[4].mxu0 }
 0x343   :  { %v510_v40 = vpop.f32.mrb[4].mxu1  ;;  %v1774_v41 = vpop.f32.mrb[5].mxu0  ;;  %v734_v45 = vmul.f32 0.17677669, %v730_v38  ;;  %v1097_v38 = vld [vmem:[%s2494_s11 + $0x10] sm:$0xff] }
 0x344   :  { %v514_v46 = vmul.f32 0.17677669, %v510_v40  ;;  %v1764_v48 = vpop.f32.mrb[5].mxu1  ;;  %v1098_v40 = vld [vmem:[%s2494_s11 + $0x18] sm:$0xff] }
 0x345   :  { %v784_v51 = vadd.f32 %v783_v42, %v734_v45  ;;  %v1903_v41 = vpack.c.bf16 %v1098_v40, %v1097_v38  ;;  %v1099_v42 = vld [vmem:[%s2494_s11 + $0x20] sm:$0xff]  ;;  %v1100_v45 = vld [vmem:[%s2494_s11 + $0x28] sm:$0xff] }
 0x346   :  { %v572_v49 = vadd.f32 %v571_v39, %v514_v46  ;;  %v1899_v39 = vpack.c.bf16 %v1096_v37, %v1095_v36  ;;  %v1907_v46 = vpack.c.bf16 %v1100_v45, %v1099_v42  ;;  %v1617_v42 = vld [vmem:[%s2522_s19] ss:$0 sm:$0xff] }
 0x347   :  { %v785_v52 = vsel %vm573_vm13, %v784_v51, -inf }
 0x348   :  { %v574_v50 = vsel %vm573_vm13, %v572_v49, -inf  ;;  %1900 = vmatprep.subr.bf16.mxu0 %v1899_v39 }
 0x349   :  { %575 = vmax.xlane.f32.xlu1 %v574_v50 }
 0x34d   :  { %786 = vmax.xlane.f32.xlu1 %v785_v52 }
 0x3d6   :  { %v576_v53 = vpop.xlane.xlu1 %575 }
 0x3d7   :  { %v577_v54 = vsub.f32 %v572_v49, %v576_v53 }
 0x3d9   :  { %v578_v55 = vmul.f32 1.442695, %v577_v54 }
 0x3da   :  { %v787_v56 = vpop.xlane.xlu1 %786 }
 0x3db   :  { %1935 = vpow2.f32 %v578_v55  ;;  %v788_v57 = vsub.f32 %v784_v51, %v787_v56  ;;  %v1609_v55 = vld [vmem:[%s2490_s7] ss:$0 sm:$0xff]  ;;  %s1249_s7 = scalar_select %p1248_p13, 1, 0 }
 0x3dd   :  { %v789_v58 = vmul.f32 1.442695, %v788_v57  ;;  %v1610_v57 = vld [vmem:[%s2491_s8] ss:$0 sm:$0xff]  ;;  %s2416_s8 = scalar_select %p1264_p3, 1, 0 }
 0x3de   :  { %s1250_s4 = sadd.s32 %s1249_s7, %s1246_s1  ;;  %s2523_s1 = sld [smem:[#allocation18_spill]] }
 0x3df   :  { %1937 = vpow2.f32 %v789_v58  ;;  %s1254_s28 = sadd.s32 %s1253_s18, %s1250_s4  ;;  %s1412_s7 = sadd.s32 %s1411_s26, %s1408_s21 }
 0x3e0   :  { %s1419_s18 = scalar_select %p1418_p12, 1, 0 }
 0x3e5   :  { %v1936_v59 = vpop.eup %1935 }
 0x3e6   :  { %v580_v60 = vsel %vm573_vm13, %v1936_v59, 0.0 }
 0x3e7   :  { %581 = vadd.xlane.f32.xlu0 %v580_v60 }
 0x3e9   :  { %v1938_v61 = vpop.eup %1937 }
 0x3ea   :  { %v791_v62 = vsel %vm573_vm13, %v1938_v61, 0.0 }
 0x3eb   :  { %792 = vadd.xlane.f32.xlu1 %v791_v62 }
 0x474   :  { %v582_v2 = vpop.xlane.xlu0 %581 }
 0x475   :  { %1939 = vrcp.f32 %v582_v2  ;;  %v1911_v2 = vpack.c.bf16 %v1102_v1, %v1101_v0 }
 0x478   :  { %v793_v3 = vpop.xlane.xlu1 %792 }
 0x479   :  { %1941 = vrcp.f32 %v793_v3  ;;  %v1611_v3 = vld [vmem:[%s2493_s10] ss:$0 sm:$0xff]  ;;  %s2521_s10 = sld [smem:[#allocation13_spill]] }
 0x47f   :  { %v1940_v4 = vpop.eup %1939  ;;  %p1422_p13 = scmp.ne.s32.totalorder %s2521_s10, 0 }
 0x480   :  { %v584_v5 = vmul.f32 %v1940_v4, %v1936_v59 }
 0x482   :  { %1768 = vmatmul.mubr.msk.f32.vlgmr.msra.gmra.mrb[6].mxu1 %vm573_vm13, %v584_v5 }
 0x483   :  { %v1942_v6 = vpop.eup %1941  ;;  %1776 = vmatpush3.msra.mxu1 %v2221_v47  ;;  %1777 = vmatprep.mubr.msk.f32.mxu1 %vm2015_vm4, %v2014_v24 }
 0x484   :  { %v795_v7 = vmul.f32 %v1942_v6, %v1938_v61 }
 0x486   :  { %1778 = vmatmul.mubr.msk.f32.vlgmr.msra.gmra.mrb[8].mxu1 %vm573_vm13, %v795_v7 }
 0x555   :  { %v654_v11 = vpop.f32.mrb[6].mxu1 }
 0x556   :  { %v1769_v12 = vpop.f32.mrb[7].mxu1  ;;  %1788 = vmatprep.mubr.msk.f32.mxu0 %vm196_vm3, %v654_v11 }
 0x559   :  { %v865_v47 = vpop.f32.mrb[8].mxu1 }
 0x55a   :  { %v1779_v13 = vpop.f32.mrb[9].mxu1  ;;  %1789 = vmatmul.mubr.msk.f32.vlgmr.msra.gmra.mrb[6].mxu0 %vm196_vm3, %v865_v47 }
 0x55b   :  { %1902 = vmatpush3.bf16.msra.mxu0 %v1899_v39 }
 0x55c   :  { %1904 = vmatprep.subr.bf16.mxu0 %v1903_v41 }
 0x55f   :  { %1906 = vmatpush3.bf16.msra.mxu0 %v1903_v41 }
 0x560   :  { %1908 = vmatprep.subr.bf16.mxu0 %v1907_v46 }
 0x563   :  { %1910 = vmatpush3.bf16.msra.mxu0 %v1907_v46  ;;  %v1618_v46 = vld [vmem:[%s2523_s1] ss:$0 sm:$0xff] }
 0x564   :  { %1912 = vmatprep.subr.bf16.mxu0 %v1911_v2 }
 0x567   :  { %1914 = vmatpush3.bf16.msra.mxu0 %v1911_v2 }
 0x62d   :  { %v1790_v14 = vpop.f32.mrb[6].mxu0 }
 0x62e   :  { %v945_v15 = vpop.f32.mrb[7].mxu0  ;;  %v955_v17 = vadd.f32 %v1790_v14, %v2202_v44  ;;  %v1001_v44 = vld [vmem:[%s2492_s9] sm:$0xff]  ;;  %s2418_s9 = scalar_select %p1268_p4, 1, 0 }
 0x62f   :  { %v954_v16 = vadd.f32 %v945_v15, %v2200_v43  ;;  %v1891_v32 = vpack.c.bf16 %v1002_v31, %v1001_v44  ;;  %v2016_v31 = vmov 0.0|0.0  }
 0x630   :  { %v961_v19 = vsel %vm196_vm3, %v955_v17, 0.0 }
 0x631   :  { %v958_v18 = vsel %vm196_vm3, %v954_v16, 0.0  ;;  %1892 = vmatprep.subr.bf16.mxu1 %v1891_v32 }
 0x632   :  { %959 = vadd.xlane.f32.xlu1 %v958_v18  ;;  %1894 = vmatpush3.bf16.msra.mxu1 %v1891_v32  ;;  %v1241_v32 = vld [vmem:[%s2498_s15 + $0x10] sm:$0xff] }
 0x633   :  { %1896 = vmatprep.subr.bf16.mxu1 %v1895_v35  ;;  %v2403_v34 = vpack.c.bf16 %v1242_v33, %v1241_v32 }
 0x636   :  { %962 = vadd.xlane.f32.xlu1 %v961_v19  ;;  %1898 = vmatpush3.bf16.msra.mxu1 %v1895_v35 }
 0x637   :  { %1915 = vmatprep.subr.bf16.mxu1 %v2016_v31 }
 0x6bf   :  { %v960_v20 = vpop.xlane.xlu1 %959 }
 0x6c0   :  { %v965_v21 = vmul.f32 0.03125, %v960_v20 }
 0x6c2   :  { %v967_v23 = vsub.f32 %v954_v16, %v965_v21 }
 0x6c3   :  { %v963_v25 = vpop.xlane.xlu1 %962 }
 0x6c4   :  { %v966_v26 = vmul.f32 0.03125, %v963_v25  ;;  %v969_v27 = vmul.f32 %v967_v23, %v967_v23 }
 0x6c6   :  { %v968_v28 = vsub.f32 %v955_v17, %v966_v26  ;;  %v971_v29 = vsel %vm196_vm3, %v969_v27, 0.0 }
 0x6c7   :  { %972 = vadd.xlane.f32.xlu1 %v971_v29 }
 0x6c8   :  { %v970_v30 = vmul.f32 %v968_v28, %v968_v28 }
 0x6ca   :  { %v974_v43 = vsel %vm196_vm3, %v970_v30, 0.0  ;;  %v1239_v30 = vld [vmem:[%s2498_s15] sm:$0xff] }
 0x6cb   :  { %975 = vadd.xlane.f32.xlu1 %v974_v43  ;;  %v1240_v43 = vld [vmem:[%s2498_s15 + $0x8] sm:$0xff]  ;;  %s1257_s15 = scalar_select %p1256_p1, 1, 0 }
 0x6cc   :  { %v2393_v44 = vpack.c.bf16 %v1240_v43, %v1239_v30 }
 0x6cd   :  { %s1258_s30 = sadd.s32 %s1257_s15, %s1254_s28  ;;  %s1416_s15 = sadd.s32 %s1415_s3, %s1412_s7 }
 0x6ce   :  { %s1262_s22 = sadd.s32 %s1261_s14, %s1258_s30 }
 0x6cf   :  { %s1266_s11 = sadd.s32 %s2416_s8, %s1262_s22  ;;  %s2017_s22 = smov [#allocation8]  }
 0x6d0   :  { %s1270_s0 = sadd.s32 %s2418_s9, %s1266_s11  ;;  %s1420_s9 = sadd.s32 %s1419_s18, %s1416_s15 }
 0x6d1   :  { %s1274_s25 = sadd.s32 %s1273_s27, %s1270_s0  ;;  %s1551_s13 = sshll.u32 %s2017_s22, 4  ;;  %s1552_s13 = int_to_ptr.vmem [resolvable:$true] %s1551_s13 }
 0x6d2   :  { %p1275_p0 = scmp.gt.s32.totalorder %s1274_s25, 0  ;;  %s1626_s14 = sadd.s32 4294967295, %s1274_s25 }
 0x6d3   :  { %s1423_s8 = scalar_select %p1422_p13, 1, 0 }
 0x6d4   :  { %s2528_s14 = smov (!%p1275_p0, %s1626_s14), 7  ;;  %s1983_s2 = scalar_lea.vmem %s1552_s13, 16 }
 0x6d5   :  { %s1424_s4 = sadd.s32 %s1423_s8, %s1420_s9  ;;  %s1278_s28 = scalar_lea.vmem [#allocation2], %s2528_s14 }
 0x6d6   :  { %p1425_p1 = scmp.gt.s32.totalorder %s1424_s4, 0  ;;  %s1636_s5 = sadd.s32 4294967295, %s1424_s4 }
 0x6d7   :  { %p1984_p2 = scmp.ne.s32.totalorder %s1552_s13, %s1983_s2  ;;  %s1987_s10 = scalar_lea.vmem %s1552_s13, 32 }
 0x6d8   :  { %s2530_s5 = smov (!%p1425_p1, %s1636_s5), 7  ;;  %p1988_p3 = scmp.lt.s32.totalorder %s1552_s13, %s1552_s13 }
 0x6d9   :  { %s1566_s17 = scalar_lea.vmem [#allocation2], %s2530_s5  ;;  %p1989_p4 = scmp.lt.s32.totalorder %s1987_s10, %s1983_s2 }
 0x6db   :  { %p1990_p5 = por %p1989_p4, %p1988_p3 }
 0x6dd   :  { %p1991_p6 = pnand %p1990_p5, %p1984_p2 }
 0x754   :  { %v973_v48 = vpop.xlane.xlu1 %972 }
 0x755   :  { %v977_v49 = vmul.f32 0.03125, %v973_v48 }
 0x757   :  { %v979_v50 = vadd.f32 1e-05, %v977_v49 }
 0x758   :  { %v976_v51 = vpop.xlane.xlu1 %975 }
 0x759   :  { %1943 = vrsqrt.f32 %v979_v50  ;;  %v978_v52 = vmul.f32 0.03125, %v976_v51 }
 0x75b   :  { %v980_v53 = vadd.f32 1e-05, %v978_v52 }
 0x75d   :  { %1945 = vrsqrt.f32 %v980_v53 }
 0x763   :  { %v1944_v54 = vpop.eup %1943 }
 0x764   :  { %v983_v56 = vmul.f32 %v1944_v54, %v967_v23 }
 0x766   :  { %v991_v58 = vmul.f32 %v1609_v55, %v983_v56  ;;  %v1243_v56 = vld [vmem:[%s2524_s20] sm:$0x1] }
 0x767   :  { %v1946_v59 = vpop.eup %1945 }
 0x768   :  { %v984_v60 = vmul.f32 %v1946_v59, %v968_v28  ;;  %v999_v61 = vadd.f32 %v1610_v57, %v991_v58 }
 0x76a   :  { %v992_v62 = vmul.f32 %v1609_v55, %v984_v60  ;;  %1799 = vmatprep.mubr.msk.f32.mxu1 %vm196_vm3, %v999_v61 }
 0x76c   :  { %v1000_v63 = vadd.f32 %v1610_v57, %v992_v62 }
 0x76e   :  { %1800 = vmatmul.mubr.msk.f32.vlgmr.msra.gmra.mrb[10].mxu1 %vm196_vm3, %v1000_v63 }
 0x76f   :  { %1829 = vmatprep.mubr.msk.f32.mxu1 %vm2015_vm4, %v2014_v24  ;;  %1917 = vmatpush3.bf16.msra.mxu1 %v2393_v44 }
 0x770   :  { %1918 = vmatprep.subr.bf16.mxu1 %v2016_v31 }
 0x773   :  { %1920 = vmatpush3.bf16.msra.mxu1 %v2403_v34 }
 0x774   :  { %1921 = vmatprep.subr.bf16.mxu1 %v2016_v31 }
 0x841   :  { %v1801_v4 = vpop.f32.mrb[10].mxu1 }
 0x842   :  { %v1090_v5 = vadd.f32 %v1801_v4, %v1611_v3  ;;  %v1084_v6 = vpop.f32.mrb[11].mxu1 }
 0x843   :  { %v1085_v7 = vadd.f32 %v1611_v3, %v1084_v6 }
 0x844   :  { %v1094_v9 = vmax.f32 %v1090_v5, 0.0 }
 0x845   :  { %v1093_v8 = vmax.f32 %v1085_v7, 0.0 }
 0x847   :  { %1818 = vmatprep.mubr.msk.f32.mxu0 %vm110_vm0, %v1093_v8 }
 0x848   :  { %1819 = vmatmul.mubr.msk.f32.vlgmr.msra.gmra.mrb[8].mxu0 %vm110_vm0, %v1094_v9 }
 0x91b   :  { %v1820_v11 = vpop.f32.mrb[8].mxu0 }
 0x91c   :  { %v1182_v12 = vpop.f32.mrb[9].mxu0  ;;  %v1188_v47 = vadd.f32 %v1820_v11, %v1614_v10 }
 0x91d   :  { %v1183_v13 = vadd.f32 %v1614_v10, %v1182_v12  ;;  %v1367_v12 = vstv %s1366_s24 }
 0x91e   :  { %v1192_v16 = vadd.f32 %v1188_v47, %v1000_v63  ;;  %vm1368_vm1 = vcmp.eq.s32.totalorder %v2161_v22, %v1367_v12 }
 0x91f   :  { %v1191_v14 = vadd.f32 %v1183_v13, %v999_v61 }
 0x920   :  { %v1198_v17 = vsel %vm196_vm3, %v1192_v16, 0.0 }
 0x921   :  { %v1195_v15 = vsel %vm196_vm3, %v1191_v14, 0.0 }
 0x922   :  { %1196 = vadd.xlane.f32.xlu1 %v1195_v15 }
 0x926   :  { %1199 = vadd.xlane.f32.xlu1 %v1198_v17  ;;  %v1517_v17 = vstv %s1639_s29 }
 0x927   :  { %vm1518_vm2 = vcmp.eq.s32.totalorder %v2161_v22, %v1517_v17 }
 0x9af   :  { %v1197_v18 = vpop.xlane.xlu1 %1196 }
 0x9b0   :  { %v1201_v19 = vmul.f32 0.03125, %v1197_v18 }
 0x9b2   :  { %v2377_v20 = vsub.f32 %v1191_v14, %v1201_v19 }
 0x9b3   :  { %v1200_v21 = vpop.xlane.xlu1 %1199 }
 0x9b4   :  { %v1202_v23 = vmul.f32 0.03125, %v1200_v21  ;;  %v1205_v25 = vmul.f32 %v2377_v20, %v2377_v20 }
 0x9b6   :  { %v2381_v26 = vsub.f32 %v1192_v16, %v1202_v23  ;;  %v1207_v27 = vsel %vm196_vm3, %v1205_v25, 0.0 }
 0x9b7   :  { %1208 = vadd.xlane.f32.xlu1 %v1207_v27 }
 0x9b8   :  { %v1206_v28 = vmul.f32 %v2381_v26, %v2381_v26 }
 0x9ba   :  { %v1210_v29 = vsel %vm196_vm3, %v1206_v28, 0.0 }
 0x9bb   :  { %1211 = vadd.xlane.f32.xlu0 %v1210_v29 }
 0xa44   :  { %v1209_v35 = vpop.xlane.xlu1 %1208 }
 0xa45   :  { %v1213_v36 = vmul.f32 0.03125, %v1209_v35 }
 0xa47   :  { %v1215_v37 = vadd.f32 1e-05, %v1213_v36 }
 0xa48   :  { %v1212_v38 = vpop.xlane.xlu0 %1211 }
 0xa49   :  { %1947 = vrsqrt.f32 %v1215_v37  ;;  %v1214_v39 = vmul.f32 0.03125, %v1212_v38 }
 0xa4b   :  { %v1216_v40 = vadd.f32 1e-05, %v1214_v39 }
 0xa4d   :  { %1949 = vrsqrt.f32 %v1216_v40 }
 0xa53   :  { %v1948_v41 = vpop.eup %1947 }
 0xa54   :  { %v1219_v45 = vmul.f32 %v1948_v41, %v2377_v20 }
 0xa56   :  { %v1227_v48 = vmul.f32 %v1617_v42, %v1219_v45 }
 0xa57   :  { %v1950_v49 = vpop.eup %1949 }
 0xa58   :  { %v1235_v50 = vadd.f32 %v1618_v46, %v1227_v48  ;;  %v1220_v51 = vmul.f32 %v1950_v49, %v2381_v26 }
 0xa5a   :  { %1237 = vst.msk [vmem:[#allocation2] sm:$0xff] %vm196_vm3, %v1235_v50  ;;  %v1228_v52 = vmul.f32 %v1617_v42, %v1220_v51 }
 0xa5c   :  { %v1236_v53 = vadd.f32 %v1618_v46, %v1228_v52 }
 0xa5e   :  { %1238 = vst.msk [vmem:[#allocation2 + $0x8] sm:$0xff] %vm196_vm3, %v1236_v53 }
 0xa65   :  { %v1279_v54 = vld [vmem:[%s1278_s28] sm:$0x1]  ;;  %v1637_v55 = vld [vmem:[%s1566_s17 + $0x8] sm:$0x1] }
 0xa66   :  { %1830 = vmatmul.mubr.msk.f32.vlgmr.msra.gmra.mrb[12].mxu1 %vm196_vm3, %v1279_v54 }
 0xa67   :  { %1923 = vmatpush3.bf16.msra.mxu1 %v2393_v44  ;;  %1840 = vmatprep.mubr.msk.f32.mxu1 %vm2015_vm4, %v2014_v24 }
 0xa68   :  { %1924 = vmatprep.subr.bf16.mxu1 %v2016_v31 }
 0xa6b   :  { %1926 = vmatpush3.bf16.msra.mxu1 %v2403_v34 }
 0xa6e   :  { %1841 = vmatmul.mubr.msk.f32.vlgmr.msra.gmra.mrb[14].mxu1 %vm196_vm3, %v1637_v55 }
 0xb39   :  { %v1349_v57 = vpop.f32.mrb[12].mxu1 }
 0xb3a   :  { %v1350_v58 = vadd.f32 %v1349_v57, %v1243_v56  ;;  %v1831_v59 = vpop.f32.mrb[13].mxu1 }
 0xb3c   :  { %v1354_v60 = vsel %vm1353_vm14, %v1350_v58, -inf  ;;  %v1369_v16 = vsel %vm1368_vm1, %v1350_v58, 0.0 }
 0xb3d   :  { %1355 = vmax.xlane.f32.xlu1 %v1354_v60  ;;  %v1370_v18 = vsel %vm1353_vm14, %v1369_v16, 0.0 }
 0xb41   :  { %v1500_v24 = vpop.f32.mrb[14].mxu1 }
 0xb42   :  { %v1501_v61 = vadd.f32 %v1500_v24, %v1243_v56  ;;  %v1842_v62 = vpop.f32.mrb[15].mxu1 }
 0xb44   :  { %v1504_v63 = vsel %vm1353_vm14, %v1501_v61, -inf  ;;  %v1519_v21 = vsel %vm1518_vm2, %v1501_v61, 0.0 }
 0xb45   :  { %1505 = vmax.xlane.f32.xlu0 %v1504_v63  ;;  %v1520_v23 = vsel %vm1353_vm14, %v1519_v21, 0.0 }
 0xbca   :  { %v1356_v0 = vpop.xlane.xlu1 %1355 }
 0xbcb   :  { %v1357_v1 = vsub.f32 %v1350_v58, %v1356_v0  ;;  %vm1375_vm15 = vcmp.eq.f32.partialorder %v1350_v58, %v1356_v0 }
 0xbcc   :  { %v1376_v2 = vsel %vm1375_vm15, %v2161_v22, 4 }
 0xbcd   :  { %v1358_v3 = vmul.f32 1.442695, %v1357_v1  ;;  %v1377_v4 = vsel %vm1353_vm14, %v1376_v2, 2147483647 }
 0xbce   :  { %v1379_v5 = vshra.s32 %v1377_v4, 16  ;;  %v1378_v25 = vand.u32 65535, %v1377_v4 }
 0xbcf   :  { %1951 = vpow2.f32 %v1358_v3 }
 0xbd0   :  { %v1381_v6 = vcvt.s32.f32 %v1379_v5  ;;  %v1380_v27 = vcvt.s32.f32 %v1378_v25 }
 0xbd2   :  { %v1506_v7 = vpop.xlane.xlu0 %1505  ;;  %1382 = vmin.xlane.f32.xlu1 %v1381_v6 }
 0xbd3   :  { %v1507_v8 = vsub.f32 %v1501_v61, %v1506_v7  ;;  %vm1525_vm0 = vcmp.eq.f32.partialorder %v1501_v61, %v1506_v7 }
 0xbd4   :  { %v1526_v9 = vsel %vm1525_vm0, %v2161_v22, 4 }
 0xbd5   :  { %v1508_v10 = vmul.f32 1.442695, %v1507_v8  ;;  %v1527_v11 = vsel %vm1353_vm14, %v1526_v9, 2147483647 }
 0xbd6   :  { %v1529_v47 = vshra.s32 %v1527_v11, 16  ;;  %v1528_v29 = vand.u32 65535, %v1527_v11 }
 0xbd7   :  { %1953 = vpow2.f32 %v1508_v10 }
 0xbd8   :  { %v1531_v13 = vcvt.s32.f32 %v1529_v47  ;;  %v1530_v43 = vcvt.s32.f32 %v1528_v29 }
 0xbd9   :  { %v1952_v14 = vpop.eup %1951 }
 0xbda   :  { %1532 = vmin.xlane.f32.xlu0 %v1531_v13  ;;  %v1360_v15 = vsel %vm1353_vm14, %v1952_v14, 0.0 }
 0xbdb   :  { %1361 = vadd.xlane.f32.xlu1 %v1360_v15 }
 0xbdf   :  { %1371 = vadd.xlane.f32.xlu1 %v1370_v18 }
 0xbe1   :  { %v1954_v19 = vpop.eup %1953 }
 0xbe2   :  { %v1510_v20 = vsel %vm1353_vm14, %v1954_v19, 0.0 }
 0xbe3   :  { %1511 = vadd.xlane.f32.xlu0 %v1510_v20 }
 0xbe7   :  { %1521 = vadd.xlane.f32.xlu0 %v1520_v23 }
 0xc5f   :  { %v1383_v26 = vpop.xlane.xlu1 %1382 }
 0xc60   :  { %vm1384_vm3 = vcmp.eq.f32.partialorder %v1381_v6, %v1383_v26 }
 0xc61   :  { %v1385_v28 = vsel %vm1384_vm3, %v1380_v27, inf }
 0xc62   :  { %1386 = vmin.xlane.f32.xlu1 %v1385_v28 }
 0xc67   :  { %v1533_v30 = vpop.xlane.xlu0 %1532 }
 0xc68   :  { %v1362_v44 = vpop.xlane.xlu1 %1361  ;;  %vm1534_vm4 = vcmp.eq.f32.partialorder %v1531_v13, %v1533_v30 }
 0xc69   :  { %v1535_v22 = vsel %vm1534_vm4, %v1530_v43, inf  ;;  %1955 = vlog2.f32 %v1362_v44 }
 0xc6a   :  { %1536 = vmin.xlane.f32.xlu0 %v1535_v22 }
 0xc6c   :  { %v1372_v38 = vpop.xlane.xlu1 %1371 }
 0xc70   :  { %v1512_v31 = vpop.xlane.xlu0 %1511 }
 0xc71   :  { %1957 = vlog2.f32 %v1512_v31 }
 0xc73   :  { %v1956_v32 = vpop.eup %1955 }
 0xc74   :  { %v1364_v33 = vmul.f32 0.6931472, %v1956_v32  ;;  %v1522_v39 = vpop.xlane.xlu0 %1521 }
 0xc76   :  { %v1365_v35 = vadd.f32 %v1364_v33, %v1356_v0 }
 0xc78   :  { %v1373_v40 = vsub.f32 %v1365_v35, %v1372_v38 }
 0xc7b   :  { %v1958_v34 = vpop.eup %1957 }
 0xc7c   :  { %v1514_v36 = vmul.f32 0.6931472, %v1958_v34 }
 0xc7e   :  { %v1515_v37 = vadd.f32 %v1514_v36, %v1506_v7 }
 0xc80   :  { %v1523_v41 = vsub.f32 %v1515_v37, %v1522_v39 }
 0xc82   :  { %v1524_v42 = vadd.f32 %v1523_v41, %v1373_v40 }
 0xc84   :  { %v1543_v45 = vmul.f32 0.5, %v1524_v42 }
 0xc86   :  { %1544 = vst.msk [vmem:[#allocation8] sm:$0x1] %vm1392_vm5, %v1543_v45 }
 0xc87   :  { %1994 = shalt.err (!%p1991_p6)
}
 0xc88   :  { %s2525_s12 = sld [smem:[#allocation20_spill]] }
 0xc8e   :  { %s1995_s6 = scalar_lea.hbm %s2525_s12, 16 }
 0xc8f   :  { %p1996_p7 = scmp.ne.s32.totalorder %s2525_s12, %s1995_s6  ;;  %p1999_p8 = scmp.lt.u32.totalorder %s1995_s6, %s2525_s12 }
 0xc91   :  { %p2001_p9 = pnand %p1999_p8, %p1996_p7 }
 0xc93   :  { %2004 = shalt.err (!%p2001_p9)
}
 0xc94   :  { %1554 = dma.vmem_to_hbm [thread:$0]  %s1552_s13, 16, %s2525_s12, [#allocation4]   ;;  %v1389_v46 = vcvt.f32.s32 %v1383_v26  ;;  %v1539_v52 = vcvt.f32.s32 %v1533_v30 }
 0xc95   :  { %s2526_s25 = sld [smem:[#allocation21_spill]] }
 0xc96   :  { %v1390_v49 = vshll.u32 %v1389_v46, 16  ;;  %v1540_v54 = vshll.u32 %v1539_v52, 16 }
 0xcef   :  { %v1387_v48 = vpop.xlane.xlu1 %1386 }
 0xcf0   :  { %v1388_v50 = vcvt.f32.s32 %v1387_v48 }
 0xcf2   :  { %v1391_v51 = vadd.s32 %v1390_v49, %v1388_v50 }
 0xcf4   :  { %1393 = vst.msk [vmem:[%s2526_s25] sm:$0x1] %vm1392_vm5, %v1391_v51 }
 0xcf7   :  { %v1537_v53 = vpop.xlane.xlu0 %1536 }
 0xcf8   :  { %v1538_v55 = vcvt.f32.s32 %v1537_v53 }
 0xcfa   :  { %v1541_v56 = vadd.s32 %v1540_v54, %v1538_v55 }
 0xcfc   :  { %1542 = vst.msk [vmem:[%s2526_s25 + $0x1] sm:$0x1] %vm1392_vm5, %v1541_v56 }
 0xcfd   :  { %2009 = dma.done.wait [#allocation4], 16  }
 0xcfe   :  { %2010 = vsyncadd [#allocation4], 4294967280 }
 0xcff   :  { %1562 = vsyncpa [#allocation4], 1 }
 0xd00   :  { %1563 = vsyncpa [#allocation5], 1 }
 0xd01   :  { %1564 = vsyncpa [#allocation7], 1 }

</bundles_post_ra>
